<compile_context>
chip_gen: v5e
topology: v5e:2x2
jax: 0.10.0
libtpu: 0.0.40
codegen_flags: <defaults>
</compile_context>

<pallas_src>
from functools import partial

import jax
import jax.numpy as jnp
from jax import lax
from jax.experimental import pallas as pl
from jax.experimental.pallas import tpu as pltpu


def item_tower_kernel(x_ref, ws_ref, bs_ref, wp_ref, bp_ref, out_ref, *, hidden):
    """x_ref: (TB, H+M) bf16 = [cls | metadata];  ws/bs: fused stacked gate weight;
    wp/bp: padded item projection;  out_ref: (TB, E_pad) f32 L2-normalized."""
    H = hidden
    x = x_ref[...]                                            # (TB, H+M) bf16

    # 1+2) fused [meta_emb | gate_pre] = x @ W_stack + b_stack
    #      single (TB, H+M) @ (H+M, 2H) MXU matmul, f32 accumulation.
    y = jnp.dot(x, ws_ref[...], preferred_element_type=jnp.float32) + bs_ref[...]
    meta_emb = y[:, :H]                                       # (TB, H) f32
    gate = jax.nn.sigmoid(y[:, H:])                           # (TB, H) f32

    # 3) gated blend (f32 VPU math; one fewer multiply than gate*a+(1-gate)*b)
    cls = x[:, :H].astype(jnp.float32)                        # lane-aligned slice
    fused = meta_emb + gate * (cls - meta_emb)                # (TB, H) f32

    # 4) item projection into lane-dense padded width (padded cols are zero)
    proj = jnp.dot(fused.astype(jnp.bfloat16), wp_ref[...],
                   preferred_element_type=jnp.float32) + bp_ref[...]   # (TB, E_pad)

    # 5) dropout: eval mode => identity
    # 6) L2 normalize == x / max(||x||, 1e-12); padded lanes are exactly zero,
    #    so summing over the padded width is exact. rsqrt goes to the EUP.
    sumsq = jnp.sum(proj * proj, axis=1, keepdims=True)
    inv = lax.rsqrt(jnp.maximum(sumsq, 1e-24))
    out_ref[...] = proj * inv


def item_tower_forward(cls_emb, metadata, params, *, block_b=512):
    """cls_emb: (B, H) f32, metadata: (B, M) f32 -> (B, E) L2-normalized f32."""
    f32, bf16 = jnp.float32, jnp.bfloat16
    B, H = cls_emb.shape
    M = metadata.shape[1]

    # ---- offline weight prep (once per call, outside the kernel) ----------
    # Weights must already be (in, out); raw PyTorch nn.Linear is (out, in).
    w_meta = params["w_meta"].astype(f32)
    assert w_meta.shape == (M, H), "w_meta must be (metadata_dim, hidden) [in,out]"
    b_meta = params["b_meta"].astype(f32).reshape(1, H)
    w_gate_a = params["w_gate_a"].astype(f32)
    w_gate_b = params["w_gate_b"].astype(f32)
    assert w_gate_a.shape == (H, H) and w_gate_b.shape == (H, H)
    b_gate = params["b_gate"].astype(f32).reshape(1, H)
    w_proj = params["w_proj"].astype(f32)
    E = w_proj.shape[1]
    assert w_proj.shape == (H, E), "w_proj must be (hidden, embedding_dim) [in,out]"
    b_proj = params["b_proj"].astype(f32).reshape(1, E)

    # Fused stacked weight (exact algebraic rewrite of meta-proj + gate):
    #   [meta_emb | gate_pre] = [cls | metadata] @ W_stack + b_stack
    w_stack = jnp.zeros((H + M, 2 * H), f32)
    w_stack = w_stack.at[H:, :H].set(w_meta)            # metadata -> meta_emb
    w_stack = w_stack.at[:H, H:].set(w_gate_a)          # cls      -> gate_pre
    w_stack = w_stack.at[H:, H:].set(w_meta @ w_gate_b) # metadata -> gate_pre (folded)
    b_stack = jnp.concatenate([b_meta, b_meta @ w_gate_b + b_gate], axis=1)  # (1, 2H)

    # Pad projection output to a lane-dense multiple of 128 with exact zeros.
    E_pad = max(128, ((E + 127) // 128) * 128)
    w_proj_p = jnp.zeros((H, E_pad), f32).at[:, :E].set(w_proj)
    b_proj_p = jnp.zeros((1, E_pad), f32).at[:, :E].set(b_proj)

    # bf16 weights for the MXU (accumulation stays f32 in the kernel).
    w_stack_bf = w_stack.astype(bf16)
    w_proj_bf = w_proj_p.astype(bf16)

    # bf16 activations, pre-concatenated -> one lane-dense input DMA stream.
    x = jnp.concatenate([cls_emb.astype(bf16), metadata.astype(bf16)], axis=1)  # (B, H+M)

    # ---- batch-tile selection ---------------------------------------------
    # Keep >= 2 grid steps (so dimension_semantics=("parallel",) can shard the
    # batch across both v7x TensorCores), multiple of 8 rows (sublane align).
    if B >= 16:
        TB = max(8, min(block_b, ((B // 2) // 8) * 8))
    else:
        TB = B
    # Shrink tile if the per-step VMEM estimate exceeds a conservative budget
    # sized for v7x (64 MiB physical VMEM); v5e/v6e (128 MiB) also fit.
    weight_vmem = (w_stack_bf.size * 2 + b_stack.size * 4          # Buffered(1)
                   + w_proj_bf.size * 2 + b_proj_p.size * 4)

    def act_vmem(tb):   # double-buffered bf16 input + f32 output tiles
        return 2 * tb * (H + M) * 2 + 2 * tb * E_pad * 4

    VMEM_BUDGET = 40 << 20
    while TB > 128 and weight_vmem + act_vmem(TB) > VMEM_BUDGET:
        TB = max(128, ((TB // 2) // 8) * 8)

    grid = (pl.cdiv(B, TB),)   # partial last block handled by Pallas masking
                               # (no full-array zero-pad copy in HBM).

    x_spec = pl.BlockSpec((TB, H + M), lambda i: (i, 0))
    out_spec = pl.BlockSpec((TB, E_pad), lambda i: (i, 0))

    def w_spec(shape):
        # constant block index -> fetched once, VMEM-resident across all grid
        # steps; single buffer (no point double-buffering a constant block).
        return pl.BlockSpec(shape, lambda i: (0, 0), pipeline_mode=pl.Buffered(1))

    flops = 2 * B * ((H + M) * 2 * H + H * E_pad)
    bytes_accessed = (x.size * 2 + B * E_pad * 4
                      + w_stack_bf.size * 2 + b_stack.size * 4
                      + w_proj_bf.size * 2 + b_proj_p.size * 4)
    cost = pl.CostEstimate(flops=int(flops),
                           transcendentals=int(B * (H + 1)),
                           bytes_accessed=int(bytes_accessed))

    vmem_limit = min(max(int(1.5 * (weight_vmem + act_vmem(TB))) + (4 << 20),
                         32 << 20),
                     64 << 20)

    out = pl.pallas_call(
        partial(item_tower_kernel, hidden=H),
        out_shape=jax.ShapeDtypeStruct((B, E_pad), f32),
        grid_spec=pltpu.PrefetchScalarGridSpec(
            num_scalar_prefetch=0,
            grid=grid,
            in_specs=[x_spec,
                      w_spec((H + M, 2 * H)), w_spec((1, 2 * H)),
                      w_spec((H, E_pad)), w_spec((1, E_pad))],
            out_specs=out_spec),
        compiler_params=pltpu.CompilerParams(
            dimension_semantics=("parallel",),     # megacore sharding on v7x
            vmem_limit_bytes=vmem_limit),
        cost_estimate=cost,
    )(x, w_stack_bf, b_stack, w_proj_bf, b_proj_p)

    return out[:, :E]


def _reference(cls_emb, metadata, p):
    # Pure-JAX f32 mirror of the PyTorch module's post-transformer forward.
    meta_emb = metadata @ p["w_meta"] + p["b_meta"]
    gate = jax.nn.sigmoid(cls_emb @ p["w_gate_a"] + meta_emb @ p["w_gate_b"] + p["b_gate"])
    fused = gate * cls_emb + (1.0 - gate) * meta_emb
    proj = fused @ p["w_proj"] + p["b_proj"]
    norm = jnp.maximum(jnp.sqrt(jnp.sum(proj * proj, axis=1, keepdims=True)), 1e-12)
    return proj / norm


if __name__ == "__main__":
    # Small synthetic config: hidden=128, metadata_dim=128, embedding_dim=64.
    # batch=256 with the default block_b gives TB=128 -> a 2-step grid.
    B, H, M, E = 256, 128, 128, 64
    key = jax.random.PRNGKey(0)
    k = jax.random.split(key, 9)

    # Simulated transformer CLS output + item metadata
    cls_emb = jax.random.normal(k[0], (B, H), dtype=jnp.float32)
    metadata = jax.random.normal(k[1], (B, M), dtype=jnp.float32)

    # Deterministic parameter init (synthetic, not a checkpoint load), (in, out) layout.
    s = 0.05
    params = {
        "w_meta":   s * jax.random.normal(k[2], (M, H), dtype=jnp.float32),
        "b_meta":   s * jax.random.normal(k[3], (1, H), dtype=jnp.float32),
        "w_gate_a": s * jax.random.normal(k[4], (H, H), dtype=jnp.float32),
        "w_gate_b": s * jax.random.normal(k[5], (H, H), dtype=jnp.float32),
        "b_gate":   s * jax.random.normal(k[6], (1, H), dtype=jnp.float32),
        "w_proj":   s * jax.random.normal(k[7], (H, E), dtype=jnp.float32),
        "b_proj":   s * jax.random.normal(k[8], (1, E), dtype=jnp.float32),
    }

    out = item_tower_forward(cls_emb, metadata, params)
    out = jax.block_until_ready(out)

    ref = _reference(cls_emb, metadata, params)
    assert out.shape == (B, E)
    # bf16 MXU operands and bf16 input activations (f32 accumulation) =>
    # looser tolerance vs the f32 reference.
    assert jnp.allclose(out, ref, atol=3e-2, rtol=3e-2), "mismatch vs JAX reference"
    # rows are exactly L2-normalized in f32
    assert jnp.allclose(jnp.linalg.norm(out, axis=1), 1.0, atol=1e-4)

    print("KERNEL_OK")
</pallas_src>

<mosaic_0001>
module attributes {stable_mosaic.version = 11 : i64} {
  func.func @item_tower_kernel(%arg0: i32, %arg1: memref<128x256xbf16, #tpu.memory_space<vmem>>, %arg2: memref<256x256xbf16, #tpu.memory_space<vmem>>, %arg3: memref<1x256xf32, #tpu.memory_space<vmem>>, %arg4: memref<128x128xbf16, #tpu.memory_space<vmem>>, %arg5: memref<1x128xf32, #tpu.memory_space<vmem>>, %arg6: memref<128x128xf32, #tpu.memory_space<vmem>>) attributes {dimension_semantics = [#tpu.dimension_semantics<parallel>], iteration_bounds = array<i64: 2>, scalar_prefetch = 0 : i64, scratch_operands = 0 : i64, tpu.core_type = #tpu.core_type<tc>, window_params = [{transform_indices = @transform_0, window_bounds = array<i64: 128, 256>}, {pipeline_mode = #tpu.pipeline_mode<synchronous>, transform_indices = @transform_1, window_bounds = array<i64: 256, 256>}, {pipeline_mode = #tpu.pipeline_mode<synchronous>, transform_indices = @transform_2, window_bounds = array<i64: 1, 256>}, {pipeline_mode = #tpu.pipeline_mode<synchronous>, transform_indices = @transform_3, window_bounds = array<i64: 128, 128>}, {pipeline_mode = #tpu.pipeline_mode<synchronous>, transform_indices = @transform_4, window_bounds = array<i64: 1, 128>}, {transform_indices = @transform_5, window_bounds = array<i64: 128, 128>}]} {
    %c0 = arith.constant 0 : index
    %c0_0 = arith.constant 0 : index
    %0 = vector.load %arg1[%c0, %c0_0] : memref<128x256xbf16, #tpu.memory_space<vmem>>, vector<128x256xbf16>
    %c0_1 = arith.constant 0 : index
    %c0_2 = arith.constant 0 : index
    %1 = vector.load %arg2[%c0_1, %c0_2] : memref<256x256xbf16, #tpu.memory_space<vmem>>, vector<256x256xbf16>
    %cst = arith.constant dense<0.000000e+00> : vector<128x256xf32>
    %2 = tpu.matmul %0, %1, %cst {dimension_numbers = #tpu.dot_dimension_numbers<[1], [0], [0], [1], [0, 0, 1, 1], [], []>} : vector<128x256xbf16>, vector<256x256xbf16>, vector<128x256xf32> -> vector<128x256xf32>
    %c0_3 = arith.constant 0 : index
    %c0_4 = arith.constant 0 : index
    %3 = vector.load %arg3[%c0_3, %c0_4] : memref<1x256xf32, #tpu.memory_space<vmem>>, vector<1x256xf32>
    %4 = vector.broadcast %3 : vector<1x256xf32> to vector<128x256xf32>
    %5 = arith.addf %2, %4 : vector<128x256xf32>
    %6 = vector.extract_strided_slice %5 {offsets = [0, 0], sizes = [128, 128], strides = [1, 1]} : vector<128x256xf32> to vector<128x128xf32>
    %7 = vector.extract_strided_slice %5 {offsets = [0, 128], sizes = [128, 128], strides = [1, 1]} : vector<128x256xf32> to vector<128x128xf32>
    %8 = arith.negf %7 : vector<128x128xf32>
    %9 = math.exp %8 : vector<128x128xf32>
    %cst_5 = arith.constant 1.000000e+00 : f32
    %10 = vector.broadcast %cst_5 : f32 to vector<128x128xf32>
    %11 = arith.addf %10, %9 : vector<128x128xf32>
    %12 = arith.divf %10, %11 : vector<128x128xf32>
    %13 = vector.extract_strided_slice %0 {offsets = [0, 0], sizes = [128, 128], strides = [1, 1]} : vector<128x256xbf16> to vector<128x128xbf16>
    %14 = arith.extf %13 : vector<128x128xbf16> to vector<128x128xf32>
    %15 = arith.subf %14, %6 : vector<128x128xf32>
    %16 = arith.mulf %12, %15 : vector<128x128xf32>
    %17 = arith.addf %6, %16 : vector<128x128xf32>
    %18 = arith.truncf %17 : vector<128x128xf32> to vector<128x128xbf16>
    %c0_6 = arith.constant 0 : index
    %c0_7 = arith.constant 0 : index
    %19 = vector.load %arg4[%c0_6, %c0_7] : memref<128x128xbf16, #tpu.memory_space<vmem>>, vector<128x128xbf16>
    %cst_8 = arith.constant dense<0.000000e+00> : vector<128x128xf32>
    %20 = tpu.matmul %18, %19, %cst_8 {dimension_numbers = #tpu.dot_dimension_numbers<[1], [0], [0], [1], [0, 0, 1, 1], [], []>} : vector<128x128xbf16>, vector<128x128xbf16>, vector<128x128xf32> -> vector<128x128xf32>
    %c0_9 = arith.constant 0 : index
    %c0_10 = arith.constant 0 : index
    %21 = vector.load %arg5[%c0_9, %c0_10] : memref<1x128xf32, #tpu.memory_space<vmem>>, vector<1x128xf32>
    %22 = vector.broadcast %21 : vector<1x128xf32> to vector<128x128xf32>
    %23 = arith.addf %20, %22 : vector<128x128xf32>
    %24 = arith.mulf %23, %23 : vector<128x128xf32>
    %cst_11 = arith.constant dense<0.000000e+00> : vector<128xf32>
    %25 = vector.multi_reduction <add>, %24, %cst_11 [1] : vector<128x128xf32> to vector<128xf32>
    %26 = vector.shape_cast %25 : vector<128xf32> to vector<128x1xf32>
    %cst_12 = arith.constant 1.000000e-24 : f32
    %27 = vector.broadcast %cst_12 : f32 to vector<128x1xf32>
    %28 = arith.maximumf %26, %27 : vector<128x1xf32>
    %29 = math.rsqrt %28 : vector<128x1xf32>
    %30 = vector.broadcast %29 : vector<128x1xf32> to vector<128x128xf32>
    %31 = arith.mulf %23, %30 : vector<128x128xf32>
    %c0_13 = arith.constant 0 : index
    %c0_14 = arith.constant 0 : index
    %32 = vector.load %arg6[%c0_13, %c0_14] : memref<128x128xf32, #tpu.memory_space<vmem>>, vector<128x128xf32>
    tpu.vector_store %arg6[%c0_13, %c0_14], %31 {strides = array<i32>} : memref<128x128xf32, #tpu.memory_space<vmem>>, vector<128x128xf32>,
    return
  }
  func.func @transform_0(%arg0: i32) -> (i32, i32) {
    %c0_i32 = arith.constant 0 : i32
    %c0_i32_0 = arith.constant 0 : i32
    return %arg0, %c0_i32 : i32, i32
  }
  func.func @transform_1(%arg0: i32) -> (i32, i32) {
    %c0_i32 = arith.constant 0 : i32
    %c0_i32_0 = arith.constant 0 : i32
    %c0_i32_1 = arith.constant 0 : i32
    return %c0_i32, %c0_i32_0 : i32, i32
  }
  func.func @transform_2(%arg0: i32) -> (i32, i32) {
    %c0_i32 = arith.constant 0 : i32
    %c0_i32_0 = arith.constant 0 : i32
    %c0_i32_1 = arith.constant 0 : i32
    return %c0_i32, %c0_i32_0 : i32, i32
  }
  func.func @transform_3(%arg0: i32) -> (i32, i32) {
    %c0_i32 = arith.constant 0 : i32
    %c0_i32_0 = arith.constant 0 : i32
    %c0_i32_1 = arith.constant 0 : i32
    return %c0_i32, %c0_i32_0 : i32, i32
  }
  func.func @transform_4(%arg0: i32) -> (i32, i32) {
    %c0_i32 = arith.constant 0 : i32
    %c0_i32_0 = arith.constant 0 : i32
    %c0_i32_1 = arith.constant 0 : i32
    return %c0_i32, %c0_i32_0 : i32, i32
  }
  func.func @transform_5(%arg0: i32) -> (i32, i32) {
    %c0_i32 = arith.constant 0 : i32
    %c0_i32_0 = arith.constant 0 : i32
    return %arg0, %c0_i32 : i32, i32
  }
}

</mosaic_0001>

<bundles_post_ra>
// kernel: tpu_custom_call.1
= control target key start
LH: loop header
LB: loop body
LE: loop exit
PB: predicated region body
PF: predicated region fallthrough
CT: control target
= control target key end

     0   :  { %10 = vsyncpa [#allocation3], 0  ;;  %s2988_s0 = inlined_call_operand.hbm [shape: bf16[256,256], index: 0, kind: input, shape index: {}]   ;;  %s2989_s1 = inlined_call_operand.hbm [shape: bf16[256,256], index: 1, kind: input, shape index: {}]   ;;  %s2990_s2 = inlined_call_operand.hbm [shape: f32[1,256], index: 2, kind: input, shape index: {}]   ;;  %s2991_s3 = inlined_call_operand.hbm [shape: bf16[128,128], index: 3, kind: input, shape index: {}]   ;;  %s2992_s4 = inlined_call_operand.vmem [shape: f32[1,128], index: 4, kind: input, shape index: {}]   ;;  %s2993_s5 = inlined_call_operand.hbm [shape: f32[256,128], index: 5, kind: output, shape index: {}]  }
   0x1   :  { %12 = vsyncpa [#allocation3 + $0x1], 0 }
   0x2   :  { %13 = vsyncpa [#allocation6], 0 }
   0x3   :  { %14 = vsyncpa [#allocation9], 0 }
   0x4   :  { %15 = vsyncpa [#allocation4], 0 }
   0x5   :  { %17 = vsyncpa [#allocation4 + $0x1], 0  ;;  %s2412_s18 = smov 0   ;;  %s2414_s19 = smov 0  }
   0x6   :  { %s2416_s20 = smov 0   ;;  %s2418_s21 = smov 0  }
   0x7 LB: > { %s2433_s22 = sadd.s32 4294967295, %s2371_s21   ;;  %s1653_s23 = sadd.s32 4294967294, %s2371_s21   ;;  %s2371_s21 = sphi %s2418_s21, %s3012_s21   ;;  %s2367_s20 = sphi %s2416_s20, %s3011_s20   ;;  %s2363_s19 = sphi %s2414_s19, %s3010_s19   ;;  %s2359_s18 = sphi %s2412_s18, %s3009_s18  }
   0x8   : > { %p43_p0 = scmp.ne.s32.totalorder %s2363_s19, %s2359_s18  ;;  %p44_p1 = scmp.eq.s32.totalorder %s2433_s22, 0 }
   0x9   : > { %p151_p2 = scmp.eq.s32.totalorder %s2433_s22, 1  ;;  %p157_p3 = scmp.eq.s32.totalorder %s1653_s23, 1 }
   0xa   : > { %p2442_p4 = por %p44_p1, %p43_p0  ;;  %p1654_p5 = scmp.ge.s32.totalorder %s2371_s21, 1 }
   0xb   : > { %p2447_p6 = por %p157_p3, %p43_p0  ;;  %p164_p7 = scmp.lt.s32.totalorder %s2371_s21, 3 }
   0xc   : > { %s175_s28 = sshll.u32 %s2989_s1, 4  ;;  %s2373_s30 = smov [#allocation5]   ;;  %s176_s28 = int_to_ptr.hbm [resolvable:$true] %s175_s28 }
   0xd   : > { %p2455_p8 = pnand %p1654_p5, %p164_p7  ;;  %s177_s6 = sshll.u32 %s2373_s30, 4  ;;  %s178_s6 = int_to_ptr.vmem [resolvable:$true] %s177_s6 }
   0xe   : > { %s190_s10 = sshll.u32 %s2990_s2, 4  ;;  %s2994_s11 = smov 128   ;;  %s191_s10 = int_to_ptr.hbm [resolvable:$true] %s190_s10 }
   0xf   : > { %p2013_p9 = pneg %p2455_p8  ;;  %s2375_s12 = smov 8  }
  0x10   : > { %s2376_s13 = smov [#allocation7]   ;;  %s201_s17 = sshll.u32 %s2991_s3, 4  ;;  %s202_s17 = int_to_ptr.hbm [resolvable:$true] %s201_s17 }
  0x11   : > { %p2463_p10 = pnand %p2013_p9, %p44_p1  ;;  %s192_s14 = sshll.u32 %s2376_s13, 4  ;;  %s193_s14 = int_to_ptr.vmem [resolvable:$true] %s192_s14 }
  0x12   : > { %s2377_s23 = smov [#allocation8]   ;;  %s2378_s27 = smov 64  }
  0x13   : > { %2016 = dma.hbm_to_vmem [thread:$0]  (!%p2463_p10), %s176_s28, 4096, %s178_s6, [#allocation6], %s2994_s11, %s2994_s11, %s2375_s12  }
  0x14   : > { %2019 = dma.hbm_to_vmem [thread:$0]  (!%p2463_p10), %s191_s10, 32, %s193_s14, [#allocation6]  }
  0x15   : > { %s203_s26 = sshll.u32 %s2377_s23, 4  ;;  %s2379_s28 = smov 4   ;;  %s204_s26 = int_to_ptr.vmem [resolvable:$true] %s203_s26 }
  0x16   : > { %2022 = dma.hbm_to_vmem [thread:$0]  (!%p2463_p10), %s202_s17, 1024, %s204_s26, [#allocation9], %s2378_s27, %s2378_s27, %s2379_s28  }
  0x17   : > { %s2484_s30 = sadd.s32 1, %s2371_s21   ;;  %s30_s8 = sadd.s32 1, %s2367_s20 }
  0x18   : > { %s27_s6 = ssub.s32 %s2371_s21, %s2484_s30  ;;  %p37_p13 = scmp.ne.s32.totalorder %s2367_s20, %s2363_s19 }
  0x19   : > { %p28_p12 = scmp.eq.s32.totalorder %s27_s6, 0  ;;  %p38_p0 = scmp.eq.s32.totalorder %s2371_s21, 0 }
  0x1a   : > { %p2497_p3 = por %p151_p2, %p37_p13  ;;  %p2034_p5 = scmp.lt.s32.totalorder %s2371_s21, 2 }
  0x1b   : > { %s2493_s9 = scalar_select %p28_p12, %s2367_s20, %s30_s8  }
  0x1c   : > { %s220_s13 = sand.u32 1, %s2367_s20   ;;  %s1915_s14 = sshll.u32 %s2371_s21, 7 }
  0x1d   : > { %p39_p7 = por %p38_p0, %p37_p13  ;;  %s1659_s7 = sshll.u32 %s220_s13, 7 }
  0x1e   : > { %s230_s17 = scalar_lea.hbm %s2988_s0, %s1915_s14  ;;  %s224_s26 = scalar_lea.vmem [#allocation2], %s1659_s7 }
  0x1f   : > { %s231_s23 = sshll.u32 %s230_s17, 4  ;;  %s233_s27 = sshll.u32 %s224_s26, 4  ;;  %s232_s23 = int_to_ptr.hbm [resolvable:$true] %s231_s23  ;;  %s234_s27 = int_to_ptr.vmem [resolvable:$true] %s233_s27 }
  0x20   : > { %p2507_p9 = pnand %p2034_p5, %p39_p7  ;;  %s221_s6 = scalar_lea.sflag [#allocation3], %s220_s13 }
  0x21   : > { %s2267_s8 = sshra.s32 %s232_s23, 4  ;;  %s2274_s7 = scalar_lea.hbm %s2988_s0, 256  ;;  %s2268_s8 = int_to_ptr.hbm [resolvable:$true] %s2267_s8 }
  0x22   : > { %s2269_s11 = scalar_lea.hbm %s2268_s8, 128  ;;  %p2271_p10 = pneg %p2507_p9 }
  0x23   : > { %p2270_p2 = scmp.ne.s32.totalorder %s2268_s8, %s2269_s11  ;;  %p2275_p0 = scmp.lt.s32.totalorder %s2268_s8, %s2988_s0 }
  0x24   : > { %p2276_p5 = scmp.lt.s32.totalorder %s2274_s7, %s2269_s11 }
  0x25   : > { %p2272_p12 = pnand %p2271_p10, %p2270_p2 }
  0x26   : > { %p2277_p7 = por %p2276_p5, %p2275_p0 }
  0x27   : > { %p2273_p13 = pneg %p2272_p12 }
  0x29   : > { %p2278_p11 = pnand %p2277_p7, %p2273_p13 }
  0x2b   : > { %2281 = shalt.err (!%p2278_p11)
}
  0x2c   : > { %s3001_s13 = smov 128   ;;  %245 = sbr.rel (%p2455_p8) target bundleno = 691 (0x2b3), region = 40 }
  0x2d   : > { %2026 = dma.hbm_to_vmem [thread:$0]  (!%p2507_p9), %s232_s23, 2048, %s234_s27, %s221_s6, %s3001_s13, %s3001_s13, %s2375_s12  }
  0x2e   : > { %s2527_s26 = sand.u32 (!%p2455_p8), 1, %s2363_s19  }
  0x2f   : > { %s1664_s11 = sshll.u32 (!%p2455_p8), %s2527_s26, 7  ;;  %s248_s8 = scalar_lea.sflag (!%p2455_p8), [#allocation3], %s2527_s26 }
  0x30   : > { %s2533_s14 = scalar_lea.vmem (!%p2455_p8), [#allocation2], %s1664_s11 }
  0x31   : > { %2342 = dma.done.wait (%p2442_p4), %s248_s8, 2048  }
  0x32   : > { %2344 = vsyncadd (%p2442_p4), %s248_s8, 4294965248 }
  0x33   : > { %2346 = dma.done.wait (%p44_p1), [#allocation6], 4128  }
  0x34   : > { %2348 = vsyncadd (%p44_p1), [#allocation6], 4294963168 }
  0x35   : > { %2350 = dma.done.wait (%p44_p1), [#allocation9], 1024  }
  0x36   : > { %2352 = vsyncadd (%p44_p1), [#allocation9], 4294966272  ;;  %v1791_v0 = vld [vmem:[#allocation5 + $0x70] sm:$0xf]  ;;  %v1947_v1 = vld [vmem:[#allocation5 + $0x74] sm:$0xf0] }
  0x37   : > { %v1783_v2 = vld [vmem:[#allocation5 + $0x60] sm:$0xf]  ;;  %v1792_v3 = vor.u32 %v1947_v1, %v1791_v0  ;;  %v1945_v4 = vld [vmem:[#allocation5 + $0x64] sm:$0xf0]  ;;  %v1775_v6 = vld [vmem:[#allocation5 + $0x50] sm:$0xf] }
  0x38   : > { %v1784_v5 = vor.u32 %v1945_v4, %v1783_v2  ;;  %v1943_v7 = vld [vmem:[#allocation5 + $0x54] sm:$0xf0]  ;;  %v1767_v9 = vld [vmem:[#allocation5 + $0x40] sm:$0xf]  ;;  %v1941_v10 = vld [vmem:[#allocation5 + $0x44] sm:$0xf0] }
  0x39   : > { %1973 = vmatpush.bf16.msra.mxu1 %v1792_v3  ;;  %1974 = vmatpush.bf16.msra.mxu2 %v1792_v3  ;;  %v1776_v8 = vor.u32 %v1943_v7, %v1775_v6  ;;  %v1768_v11 = vor.u32 %v1941_v10, %v1767_v9  ;;  %v1759_v12 = vld [vmem:[#allocation5 + $0x30] sm:$0xf]  ;;  %v1939_v13 = vld [vmem:[#allocation5 + $0x34] sm:$0xf0]  ;;  %v1751_v15 = vld [vmem:[#allocation5 + $0x20] sm:$0xf] }
  0x3a   : > { %1975 = vmatpush.bf16.msra.mxu3 %v1792_v3  ;;  %590 = vmatpush.bf16.msra.mxu0 %v1792_v3  ;;  %v1760_v14 = vor.u32 %v1939_v13, %v1759_v12  ;;  %v1937_v16 = vld [vmem:[#allocation5 + $0x24] sm:$0xf0]  ;;  %v1743_v18 = vld [vmem:[#allocation5 + $0x10] sm:$0xf]  ;;  %v1935_v19 = vld [vmem:[#allocation5 + $0x14] sm:$0xf0] }
  0x3b   : > { %v1752_v17 = vor.u32 %v1937_v16, %v1751_v15  ;;  %v1744_v20 = vor.u32 %v1935_v19, %v1743_v18  ;;  %v1735_v21 = vld [vmem:[#allocation5] sm:$0xf]  ;;  %v1933_v22 = vld [vmem:[#allocation5 + $0x4] sm:$0xf0]  ;;  %v1946_v24 = vld [vmem:[#allocation5 + $0x74] sm:$0xf] }
  0x3c   : > { %v1687_v23 = vld [vmem:[%s2533_s14 + $0x20] sm:$0xf]  ;;  %v1793_v25 = vld [vmem:[#allocation5 + $0x78] sm:$0xf0]  ;;  %v1855_v26 = vld [vmem:[#allocation5 + $0xf0] sm:$0xf]  ;;  %v1736_v30 = vor.u32 %v1933_v22, %v1735_v21 }
  0x3d   : > { %1976 = vmatpush.bf16.msra.mxu1 %v1784_v5  ;;  %1977 = vmatpush.bf16.msra.mxu2 %v1784_v5  ;;  %v1963_v27 = vld [vmem:[#allocation5 + $0xf4] sm:$0xf0]  ;;  %v1962_v28 = vld [vmem:[#allocation5 + $0xf4] sm:$0xf]  ;;  %v1857_v29 = vld [vmem:[#allocation5 + $0xf8] sm:$0xf0]  ;;  %v1796_v36 = vor.u32 %v1946_v24, %v1793_v25 }
  0x3e   : > { %1978 = vmatpush.bf16.msra.mxu3 %v1784_v5  ;;  %591 = vmatpush.bf16.msra.mxu0 %v1784_v5  ;;  %v1921_v31 = vld [vmem:[%s2533_s14 + $0x24] sm:$0xf0]  ;;  %v1703_v32 = vld [vmem:[%s2533_s14 + $0x40] sm:$0xf]  ;;  %v1856_v37 = vor.u32 %v1963_v27, %v1855_v26  ;;  %v1860_v38 = vor.u32 %v1962_v28, %v1857_v29  ;;  %v1944_v39 = vld [vmem:[#allocation5 + $0x64] sm:$0xf] }
  0x3f   : > { %v1925_v33 = vld [vmem:[%s2533_s14 + $0x44] sm:$0xf0]  ;;  %v1719_v34 = vld [vmem:[%s2533_s14 + $0x60] sm:$0xf]  ;;  %v1785_v40 = vld [vmem:[#allocation5 + $0x68] sm:$0xf0]  ;;  %v2553_v42 = vor.u32 %v1921_v31, %v1687_v23 }
  0x40   : > { %v1929_v35 = vld [vmem:[%s2533_s14 + $0x64] sm:$0xf0]  ;;  %v1847_v41 = vld [vmem:[#allocation5 + $0xe0] sm:$0xf]  ;;  %v2555_v43 = vor.u32 %v1925_v33, %v1703_v32  ;;  %v1960_v45 = vld [vmem:[#allocation5 + $0xe4] sm:$0xf]  ;;  %v1788_v48 = vor.u32 %v1944_v39, %v1785_v40 }
  0x41   : > { %1979 = vmatpush.bf16.msra.mxu1 %v1776_v8  ;;  %1980 = vmatpush.bf16.msra.mxu2 %v1776_v8  ;;  %v1961_v44 = vld [vmem:[#allocation5 + $0xe4] sm:$0xf0]  ;;  %v1849_v46 = vld [vmem:[#allocation5 + $0xe8] sm:$0xf0]  ;;  %v2557_v47 = vor.u32 %v1929_v35, %v1719_v34  ;;  %v1942_v49 = vld [vmem:[#allocation5 + $0x54] sm:$0xf] }
  0x42   : > { %1981 = vmatpush.bf16.msra.mxu3 %v1776_v8  ;;  %592 = vmatpush.bf16.msra.mxu0 %v1776_v8  ;;  %v1777_v50 = vld [vmem:[#allocation5 + $0x58] sm:$0xf0]  ;;  %v1848_v51 = vor.u32 %v1961_v44, %v1847_v41  ;;  %v1852_v52 = vor.u32 %v1960_v45, %v1849_v46  ;;  %v1839_v53 = vld [vmem:[#allocation5 + $0xd0] sm:$0xf]  ;;  %v1671_v54 = vld [vmem:[%s2533_s14] sm:$0xf] }
  0x43   : > { %v1917_v55 = vld [vmem:[%s2533_s14 + $0x4] sm:$0xf0]  ;;  %v1959_v56 = vld [vmem:[#allocation5 + $0xd4] sm:$0xf0]  ;;  %v1958_v57 = vld [vmem:[#allocation5 + $0xd4] sm:$0xf]  ;;  %v1780_v59 = vor.u32 %v1942_v49, %v1777_v50 }
  0x44   : > { %v1841_v58 = vld [vmem:[#allocation5 + $0xd8] sm:$0xf0]  ;;  %v2564_v60 = vor.u32 %v1917_v55, %v1671_v54  ;;  %v1840_v61 = vor.u32 %v1959_v56, %v1839_v53  ;;  %v1940_v63 = vld [vmem:[#allocation5 + $0x44] sm:$0xf]  ;;  %v1769_v0 = vld [vmem:[#allocation5 + $0x48] sm:$0xf0] }
  0x45   : > { %1982 = vmatpush.bf16.msra.mxu1 %v1768_v11  ;;  %1983 = vmatpush.bf16.msra.mxu2 %v1768_v11  ;;  %v1844_v62 = vor.u32 %v1958_v57, %v1841_v58  ;;  %v1831_v1 = vld [vmem:[#allocation5 + $0xc0] sm:$0xf]  ;;  %v1957_v2 = vld [vmem:[#allocation5 + $0xc4] sm:$0xf0]  ;;  %v1956_v3 = vld [vmem:[#allocation5 + $0xc4] sm:$0xf]  ;;  %v1772_v5 = vor.u32 %v1940_v63, %v1769_v0 }
  0x46   : > { %1984 = vmatpush.bf16.msra.mxu3 %v1768_v11  ;;  %593 = vmatpush.bf16.msra.mxu0 %v1768_v11  ;;  %v1833_v4 = vld [vmem:[#allocation5 + $0xc8] sm:$0xf0]  ;;  %v1832_v6 = vor.u32 %v1957_v2, %v1831_v1  ;;  %v1695_v8 = vld [vmem:[%s2533_s14 + $0x30] sm:$0xf]  ;;  %v1938_v9 = vld [vmem:[#allocation5 + $0x34] sm:$0xf] }
  0x47   : > { %v1836_v7 = vor.u32 %v1956_v3, %v1833_v4  ;;  %v1761_v10 = vld [vmem:[#allocation5 + $0x38] sm:$0xf0]  ;;  %v1823_v11 = vld [vmem:[#allocation5 + $0xb0] sm:$0xf]  ;;  %v1955_v12 = vld [vmem:[#allocation5 + $0xb4] sm:$0xf0] }
  0x48   : > { %v1954_v13 = vld [vmem:[#allocation5 + $0xb4] sm:$0xf]  ;;  %v1923_v15 = vld [vmem:[%s2533_s14 + $0x34] sm:$0xf0]  ;;  %v1711_v16 = vld [vmem:[%s2533_s14 + $0x50] sm:$0xf]  ;;  %v1824_v21 = vor.u32 %v1955_v12, %v1823_v11 }
  0x49   : > { %1985 = vmatpush.bf16.msra.mxu1 %v1760_v14  ;;  %1986 = vmatpush.bf16.msra.mxu2 %v1760_v14  ;;  %v1727_v18 = vld [vmem:[%s2533_s14 + $0x70] sm:$0xf]  ;;  %v1931_v19 = vld [vmem:[%s2533_s14 + $0x74] sm:$0xf0]  ;;  %v1936_v23 = vld [vmem:[#allocation5 + $0x24] sm:$0xf]  ;;  %v2573_v26 = vor.u32 %v1923_v15, %v1695_v8 }
  0x4a   : > { %1987 = vmatpush.bf16.msra.mxu3 %v1760_v14  ;;  %594 = vmatpush.bf16.msra.mxu0 %v1760_v14  ;;  %v1825_v14 = vld [vmem:[#allocation5 + $0xb8] sm:$0xf0]  ;;  %v1753_v24 = vld [vmem:[#allocation5 + $0x28] sm:$0xf0]  ;;  %v1815_v25 = vld [vmem:[#allocation5 + $0xa0] sm:$0xf]  ;;  %v2577_v31 = vor.u32 %v1931_v19, %v1727_v18 }
  0x4b   : > { %v1828_v22 = vor.u32 %v1954_v13, %v1825_v14  ;;  %v1953_v28 = vld [vmem:[#allocation5 + $0xa4] sm:$0xf0]  ;;  %v1952_v29 = vld [vmem:[#allocation5 + $0xa4] sm:$0xf]  ;;  %v1756_v32 = vor.u32 %v1936_v23, %v1753_v24  ;;  %v1934_v33 = vld [vmem:[#allocation5 + $0x14] sm:$0xf] }
  0x4c   : > { %v1745_v34 = vld [vmem:[#allocation5 + $0x18] sm:$0xf0]  ;;  %v1816_v35 = vor.u32 %v1953_v28, %v1815_v25  ;;  %v1919_v39 = vld [vmem:[%s2533_s14 + $0x14] sm:$0xf0]  ;;  %v1950_v41 = vld [vmem:[#allocation5 + $0x94] sm:$0xf] }
  0x4d   : > { %1988 = vmatpush.bf16.msra.mxu1 %v1752_v17  ;;  %1989 = vmatpush.bf16.msra.mxu2 %v1752_v17  ;;  %v1951_v40 = vld [vmem:[#allocation5 + $0x94] sm:$0xf0]  ;;  %v1809_v44 = vld [vmem:[#allocation5 + $0x98] sm:$0xf0]  ;;  %v1748_v45 = vor.u32 %v1934_v33, %v1745_v34  ;;  %v1932_v50 = vld [vmem:[#allocation5 + $0x4] sm:$0xf] }
  0x4e   : > { %1990 = vmatpush.bf16.msra.mxu3 %v1752_v17  ;;  %595 = vmatpush.bf16.msra.mxu0 %v1752_v17  ;;  %v1927_v17 = vld [vmem:[%s2533_s14 + $0x54] sm:$0xf0]  ;;  %v1812_v49 = vor.u32 %v1950_v41, %v1809_v44  ;;  %v1949_v53 = vld [vmem:[#allocation5 + $0x84] sm:$0xf0]  ;;  %v1948_v54 = vld [vmem:[#allocation5 + $0x84] sm:$0xf] }
  0x4f   : > { %v2575_v27 = vor.u32 %v1927_v17, %v1711_v16  ;;  %v1801_v55 = vld [vmem:[#allocation5 + $0x88] sm:$0xf0]  ;;  %v1918_v63 = vld [vmem:[%s2533_s14 + $0x14] sm:$0xf]  ;;  %v1681_v0 = vld [vmem:[%s2533_s14 + $0x18] sm:$0xf0] }
  0x50   : > { %v1804_v58 = vor.u32 %v1948_v54, %v1801_v55  ;;  %v1684_v1 = vor.u32 %v1918_v63, %v1681_v0  ;;  %v1920_v2 = vld [vmem:[%s2533_s14 + $0x24] sm:$0xf]  ;;  %v1689_v3 = vld [vmem:[%s2533_s14 + $0x28] sm:$0xf0]  ;;  %v1713_v11 = vld [vmem:[%s2533_s14 + $0x58] sm:$0xf0] }
  0x51   : > { %1991 = vmatpush.bf16.msra.mxu1 %v1744_v20  ;;  %1992 = vmatpush.bf16.msra.mxu2 %v1744_v20  ;;  %v1692_v4 = vor.u32 %v1920_v2, %v1689_v3  ;;  %v1705_v8 = vld [vmem:[%s2533_s14 + $0x48] sm:$0xf0]  ;;  %v1928_v12 = vld [vmem:[%s2533_s14 + $0x64] sm:$0xf]  ;;  %v344_v15 = vld [vmem:[#allocation7] sm:$0x3] }
  0x52   : > { %1993 = vmatpush.bf16.msra.mxu3 %v1744_v20  ;;  %596 = vmatpush.bf16.msra.mxu0 %v1744_v20  ;;  %v1764_v20 = vor.u32 %v1938_v9, %v1761_v10  ;;  %v1926_v10 = vld [vmem:[%s2533_s14 + $0x54] sm:$0xf]  ;;  %v1721_v13 = vld [vmem:[%s2533_s14 + $0x68] sm:$0xf0]  ;;  %v2605_v17 = vperm.slane %v344_v15, 0  ;;  %v1968_v44 = vld [vmem:[#allocation8 + $0x20] sm:$0xff] }
  0x53   : > { %v1724_v14 = vor.u32 %v1928_v12, %v1721_v13  ;;  %v1729_v23 = vld [vmem:[%s2533_s14 + $0x78] sm:$0xf0]  ;;  %v1965_v55 = vld [vmem:[#allocation8 + $0x8] sm:$0xff]  ;;  %s2921_s12 = scalar_lea.vmem [#allocation10], %s1664_s11  ;;  %s1972_s23 = sshll.u32 %s2433_s22, 7 }
  0x54   : > { %s1547_s6 = scalar_lea.hbm %s2993_s5, %s1972_s23  ;;  %s1548_s15 = sshll.u32 %s2921_s12, 4  ;;  %s1549_s15 = int_to_ptr.vmem [resolvable:$true] %s1548_s15 }
  0x55   : > { %1994 = vmatpush.bf16.msra.mxu1 %v1736_v30  ;;  %1995 = vmatpush.bf16.msra.mxu2 %v1736_v30  ;;  %s1550_s7 = sshll.u32 %s1547_s6, 4  ;;  %s1536_s22 = scalar_lea.sflag [#allocation4], %s2527_s26  ;;  %s1551_s7 = int_to_ptr.hbm [resolvable:$true] %s1550_s7 }
  0x56   : > { %1996 = vmatpush.bf16.msra.mxu3 %v1736_v30  ;;  %597 = vmatpush.bf16.msra.mxu0 %v1736_v30  ;;  %v1817_v30 = vld [vmem:[#allocation5 + $0xa8] sm:$0xf0]  ;;  %s2311_s16 = sshra.s32 %s1551_s7, 4  ;;  %s2317_s8 = scalar_lea.hbm %s2993_s5, 256  ;;  %s2312_s16 = int_to_ptr.hbm [resolvable:$true] %s2311_s16 }
  0x57   : > { %s2313_s17 = scalar_lea.hbm %s2312_s16, 128  ;;  %p2318_p11 = scmp.lt.s32.totalorder %s2312_s16, %s2993_s5 }
  0x58   : > { %608 = vmatmul.bf16.vlgmr.msra.gmra.mxu1 %v2553_v42  ;;  %618 = vmatmul.bf16.vlgmr.msra.gmra.mxu2 %v2555_v43  ;;  %p2314_p1 = scmp.ne.s32.totalorder %s2312_s16, %s2313_s17  ;;  %p2319_p9 = scmp.lt.s32.totalorder %s2317_s8, %s2313_s17 }
  0x59   : > { %688 = vmatpush.bf16.msrb.mxu2 %v1796_v36  ;;  %639 = vmatpush.bf16.msrb.mxu1 %v1856_v37  ;;  %v1820_v36 = vor.u32 %v1952_v29, %v1817_v30  ;;  %v1807_v37 = vld [vmem:[#allocation5 + $0x90] sm:$0xf]  ;;  %v1971_v29 = vld [vmem:[#allocation8 + $0x38] sm:$0xff] }
  0x5a   : > { %737 = vmatpush.bf16.msrb.mxu3 %v1860_v38  ;;  %598 = vmatmul.bf16.vlgmr.msra.gmra.mxu0 %v2564_v60  ;;  %v1679_v38 = vld [vmem:[%s2533_s14 + $0x10] sm:$0xf]  ;;  %p2315_p4 = pnand %p2314_p1, %p2497_p3  ;;  %p2320_p2 = por %p2319_p9, %p2318_p11 }
  0x5b   : > { %628 = vmatmul.bf16.vlgmr.msra.gmra.mxu3 %v2557_v47  ;;  %v1680_v46 = vor.u32 %v1919_v39, %v1679_v38  ;;  %1230 = vmatpush.bf16.msrb.mxu0 %v1971_v29 }
  0x5c   : > { %p2316_p8 = pneg %p2315_p4 }
  0x5d   : > { %689 = vmatpush.bf16.msrb.mxu2 %v1788_v48  ;;  %640 = vmatpush.bf16.msrb.mxu1 %v1848_v51  ;;  %v1808_v48 = vor.u32 %v1951_v40, %v1807_v37  ;;  %v1737_v51 = vld [vmem:[#allocation5 + $0x8] sm:$0xf0] }
  0x5e   : > { %738 = vmatpush.bf16.msrb.mxu3 %v1852_v52  ;;  %v1799_v52 = vld [vmem:[#allocation5 + $0x80] sm:$0xf]  ;;  %v1740_v56 = vor.u32 %v1932_v50, %v1737_v51  ;;  %v1969_v37 = vld [vmem:[#allocation8 + $0x28] sm:$0xff]  ;;  %p2321_p10 = pnand %p2320_p2, %p2316_p8 }
  0x5f   : > { %v1800_v57 = vor.u32 %v1949_v53, %v1799_v52  ;;  %v1966_v53 = vld [vmem:[#allocation8 + $0x10] sm:$0xff] }
  0x61   : > { %690 = vmatpush.bf16.msrb.mxu2 %v1780_v59  ;;  %641 = vmatpush.bf16.msrb.mxu1 %v1840_v61  ;;  %v1916_v59 = vld [vmem:[%s2533_s14 + $0x4] sm:$0xf]  ;;  %v1673_v61 = vld [vmem:[%s2533_s14 + $0x8] sm:$0xf0] }
  0x62   : > { %739 = vmatpush.bf16.msrb.mxu3 %v1844_v62  ;;  %v1676_v62 = vor.u32 %v1916_v59, %v1673_v61  ;;  %v1964_v61 = vld [vmem:[#allocation8] sm:$0xff] }
  0x65   : > { %691 = vmatpush.bf16.msrb.mxu2 %v1772_v5  ;;  %642 = vmatpush.bf16.msrb.mxu1 %v1832_v6  ;;  %v1922_v5 = vld [vmem:[%s2533_s14 + $0x34] sm:$0xf] }
  0x66   : > { %740 = vmatpush.bf16.msrb.mxu3 %v1836_v7  ;;  %v1924_v7 = vld [vmem:[%s2533_s14 + $0x44] sm:$0xf] }
  0x67   : > { %v1708_v9 = vor.u32 %v1924_v7, %v1705_v8 }
  0x68   : > { %613 = vmatmul.bf16.gmra.mxu1 %v2573_v26  ;;  %623 = vmatmul.bf16.gmra.mxu2 %v2575_v27 }
  0x69   : > { %692 = vmatpush.bf16.msrb.mxu2 %v1764_v20  ;;  %643 = vmatpush.bf16.msrb.mxu1 %v1824_v21 }
  0x6a   : > { %741 = vmatpush.bf16.msrb.mxu3 %v1828_v22  ;;  %603 = vmatmul.bf16.gmra.mxu0 %v1680_v46  ;;  %v1930_v22 = vld [vmem:[%s2533_s14 + $0x74] sm:$0xf] }
  0x6b   : > { %633 = vmatmul.bf16.gmra.mxu3 %v2577_v31 }
  0x6d   : > { %693 = vmatpush.bf16.msrb.mxu2 %v1756_v32  ;;  %644 = vmatpush.bf16.msrb.mxu1 %v1816_v35 }
  0x6e   : > { %742 = vmatpush.bf16.msrb.mxu3 %v1820_v36  ;;  %v1970_v36 = vld [vmem:[#allocation8 + $0x30] sm:$0xff] }
  0x6f   : > { %1231 = vmatpush.bf16.msrb.mxu0 %v1970_v36 }
  0x71   : > { %694 = vmatpush.bf16.msrb.mxu2 %v1748_v45  ;;  %645 = vmatpush.bf16.msrb.mxu1 %v1808_v48  ;;  %v2641_v45 = vperm.slane %v344_v15, 1 }
  0x72   : > { %743 = vmatpush.bf16.msrb.mxu3 %v1812_v49 }
  0x73   : > { %1232 = vmatpush.bf16.msrb.mxu0 %v1969_v37 }
  0x75   : > { %695 = vmatpush.bf16.msrb.mxu2 %v1740_v56  ;;  %646 = vmatpush.bf16.msrb.mxu1 %v1800_v57 }
  0x76   : > { %744 = vmatpush.bf16.msrb.mxu3 %v1804_v58 }
  0x77   : > { %1233 = vmatpush.bf16.msrb.mxu0 %v1968_v44 }
  0x78   : > { %647 = vmatmul.bf16.vlgmr.msrb.gmra.mxu1 %v1676_v62  ;;  %696 = vmatmul.bf16.vlgmr.msrb.gmra.mxu2 %v2564_v60  ;;  %v1697_v60 = vld [vmem:[%s2533_s14 + $0x38] sm:$0xf0] }
  0x79   : > { %v1700_v6 = vor.u32 %v1922_v5, %v1697_v60 }
  0x7b   : > { %745 = vmatmul.bf16.vlgmr.msrb.gmra.mxu3 %v1676_v62 }
  0x88   : > { %652 = vmatmul.bf16.gmra.mxu1 %v1684_v1  ;;  %701 = vmatmul.bf16.gmra.mxu2 %v1680_v46  ;;  %v1967_v46 = vld [vmem:[#allocation8 + $0x18] sm:$0xff] }
  0x89   : > { %1234 = vmatpush.bf16.msrb.mxu0 %v1967_v46 }
  0x8b   : > { %750 = vmatmul.bf16.gmra.mxu3 %v1684_v1 }
  0x8d   : > { %1235 = vmatpush.bf16.msrb.mxu0 %v1966_v53 }
  0x91   : > { %1236 = vmatpush.bf16.msrb.mxu0 %v1965_v55 }
  0x95   : > { %1237 = vmatpush.bf16.msrb.mxu0 %v1964_v61 }
  0x98   : > { %657 = vmatmul.bf16.gmra.mxu1 %v1692_v4  ;;  %706 = vmatmul.bf16.gmra.mxu2 %v2553_v42  ;;  %v1716_v42 = vor.u32 %v1926_v10, %v1713_v11 }
  0x9b   : > { %755 = vmatmul.bf16.gmra.mxu3 %v1692_v4 }
  0xa8   : > { %662 = vmatmul.bf16.gmra.mxu1 %v1700_v6  ;;  %711 = vmatmul.bf16.gmra.mxu2 %v2573_v26 }
  0xab   : > { %760 = vmatmul.bf16.gmra.mxu3 %v1700_v6 }
  0xb8   : > { %667 = vmatmul.bf16.gmra.mxu1 %v1708_v9  ;;  %716 = vmatmul.bf16.gmra.mxu2 %v2555_v43 }
  0xbb   : > { %765 = vmatmul.bf16.gmra.mxu3 %v1708_v9 }
  0xc8   : > { %672 = vmatmul.bf16.gmra.mxu1 %v1716_v42  ;;  %721 = vmatmul.bf16.gmra.mxu2 %v2575_v27  ;;  %v1732_v27 = vor.u32 %v1930_v22, %v1729_v23 }
  0xcb   : > { %770 = vmatmul.bf16.gmra.mxu3 %v1716_v42 }
  0xd5   : > { %v2603_v16 = vpop.f32.mrf.mxu1 }
  0xd7   : > { %v599_v62 = vpop.f32.mrf.mxu0 }
  0xd8   : > { %677 = vmatmul.bf16.gmra.mxu1 %v1724_v14  ;;  %726 = vmatmul.bf16.gmra.mxu2 %v2557_v47  ;;  %v600_v12 = vadd.f32 %v599_v62, %v2605_v17 }
  0xdb   : > { %775 = vmatmul.bf16.gmra.mxu3 %v1724_v14  ;;  %v619_v43 = vpop.f32.mrf.mxu2 }
  0xdc   : > { %v2609_v18 = vadd.f32 %v619_v43, %v2605_v17 }
  0xdd   : > { %v2614_v21 = vpop.f32.mrf.mxu1 }
  0xde   : > { %v629_v19 = vpop.f32.mrf.mxu3 }
  0xdf   : > { %v2612_v20 = vadd.f32 %v629_v19, %v2605_v17  ;;  %v601_v10 = vpop.f32.mrf.mxu0  ;;  %v296_v19 = vld [vmem:[%s2533_s14] sm:$0xf] }
  0xe0   : > { %v1090_v29 = vunpack.c.l.bf16 %v296_v19 }
  0xe3   : > { %v621_v24 = vpop.f32.mrf.mxu2 }
  0xe4   : > { %v2619_v25 = vadd.f32 %v621_v24, %v2605_v17 }
  0xe5   : > { %v2624_v28 = vpop.f32.mrf.mxu1 }
  0xe6   : > { %v631_v26 = vpop.f32.mrf.mxu3 }
  0xe7   : > { %v2622_v47 = vadd.f32 %v631_v26, %v2605_v17 }
  0xe8   : > { %682 = vmatmul.bf16.gmra.mxu1 %v1732_v27  ;;  %731 = vmatmul.bf16.gmra.mxu2 %v2577_v31 }
  0xeb   : > { %780 = vmatmul.bf16.gmra.mxu3 %v1732_v27  ;;  %v624_v30 = vpop.f32.mrf.mxu2 }
  0xec   : > { %v2628_v32 = vadd.f32 %v624_v30, %v2605_v17 }
  0xed   : > { %v2633_v35 = vpop.f32.mrf.mxu1 }
  0xee   : > { %v634_v33 = vpop.f32.mrf.mxu3 }
  0xef   : > { %v2631_v34 = vadd.f32 %v634_v33, %v2605_v17  ;;  %v297_v33 = vld [vmem:[%s2533_s14 + $0x8] sm:$0xf] }
  0xf3   : > { %v626_v38 = vpop.f32.mrf.mxu2 }
  0xf4   : > { %v2636_v39 = vadd.f32 %v626_v38, %v2605_v17 }
  0xf5   : > { %v648_v41 = vpop.f32.mrf.mxu1 }
  0xf6   : > { %v636_v31 = vpop.f32.mrf.mxu3  ;;  %v649_v24 = vadd.f32 %v648_v41, %v600_v12 }
  0xf7   : > { %v2639_v40 = vadd.f32 %v636_v31, %v2605_v17  ;;  %v602_v31 = vadd.f32 %v601_v10, %v2605_v17 }
  0xfb   : > { %v697_v48 = vpop.f32.mrf.mxu2 }
  0xfc   : > { %v698_v49 = vadd.f32 %v697_v48, %v2641_v45  ;;  %v1091_v48 = vunpack.c.l.bf16 %v297_v33 }
  0xfd   : > { %v2644_v52 = vpop.f32.mrf.mxu1 }
  0xfe   : > { %v746_v50 = vpop.f32.mrf.mxu3 }
  0xff   : > { %v747_v51 = vadd.f32 %v746_v50, %v698_v49  ;;  %v604_v50 = vpop.f32.mrf.mxu0 }
 0x101   : > { %v1861_v54 = vmul.f32 -1.442695, %v747_v51 }
 0x103   : > { %2081 = vpow2.f32 %v1861_v54  ;;  %v699_v56 = vpop.f32.mrf.mxu2  ;;  %v1106_v54 = vsub.f32 %v1090_v29, %v649_v24 }
 0x104   : > { %v700_v57 = vadd.f32 %v699_v56, %v2641_v45 }
 0x105   : > { %v2647_v1 = vpop.f32.mrf.mxu1 }
 0x106   : > { %v748_v58 = vpop.f32.mrf.mxu3 }
 0x107   : > { %v749_v59 = vadd.f32 %v748_v58, %v700_v57 }
 0x109   : > { %v2082_v63 = vpop.eup %2081  ;;  %v1862_v0 = vmul.f32 -1.442695, %v749_v59  ;;  %v651_v59 = vadd.f32 %v2644_v52, %v602_v31 }
 0x10a   : > { %v834_v2 = vadd.f32 1.0, %v2082_v63 }
 0x10b   : > { %2083 = vpow2.f32 %v1862_v0  ;;  %v702_v3 = vpop.f32.mrf.mxu2 }
 0x10c   : > { %2085 = vrcp.f32 %v834_v2  ;;  %v703_v4 = vadd.f32 %v702_v3, %v2641_v45  ;;  %v861_v38 = vand.u32 2147483648, %v834_v2  ;;  %vm855_vm1 = vweird.f32 %v834_v2 }
 0x10d   : > { %v2650_v42 = vpop.f32.mrf.mxu1  ;;  %v859_v46 = vand.u32 2147483647, %v834_v2 }
 0x10e   : > { %v751_v5 = vpop.f32.mrf.mxu3  ;;  %v862_v58 = vor.u32 1.1754944e-38, %v861_v38 }
 0x10f   : > { %v752_v60 = vadd.f32 %v751_v5, %v703_v4  ;;  %vm860_vm3 = vcmp.eq.f32.partialorder %v859_v46, 8.507059e+37  ;;  %v299_v46 = vld [vmem:[%s2533_s14 + $0x18] sm:$0xf] }
 0x111   : > { %v2084_v6 = vpop.eup %2083  ;;  %v1863_v7 = vmul.f32 -1.442695, %v752_v60 }
 0x112   : > { %v2086_v8 = vpop.eup %2085  ;;  %v835_v9 = vadd.f32 1.0, %v2084_v6 }
 0x113   : > { %v851_v11 = vmul.f32 %v2086_v8, %v834_v2  ;;  %2087 = vpow2.f32 %v1863_v7  ;;  %v704_v13 = vpop.f32.mrf.mxu2  ;;  %vm856_vm0 = vweird.f32 %v2086_v8 }
 0x114   : > { %2089 = vrcp.f32 %v835_v9  ;;  %v705_v15 = vadd.f32 %v704_v13, %v2641_v45  ;;  %vm2660_vm2 = vmor %vm855_vm1, %vm856_vm0  ;;  %v874_v61 = vand.u32 2147483647, %v835_v9  ;;  %v876_v62 = vand.u32 2147483648, %v835_v9 }
 0x115   : > { %v852_v14 = vsub.f32 1.0, %v851_v11  ;;  %v2666_v55 = vpop.f32.mrf.mxu1  ;;  %vm870_vm5 = vweird.f32 %v835_v9  ;;  %v605_v13 = vadd.f32 %v604_v50, %v2605_v17 }
 0x116   : > { %v753_v43 = vpop.f32.mrf.mxu3  ;;  %vm875_vm7 = vcmp.eq.f32.partialorder %v874_v61, 8.507059e+37  ;;  %v877_v7 = vor.u32 1.1754944e-38, %v876_v62 }
 0x117   : > { %v853_v22 = vmul.f32 %v2086_v8, %v852_v14  ;;  %v754_v23 = vadd.f32 %v753_v43, %v705_v15  ;;  %v298_v43 = vld [vmem:[%s2533_s14 + $0x10] sm:$0xf] }
 0x118   : > { %v1092_v38 = vunpack.c.l.bf16 %v298_v43 }
 0x119   : > { %v2088_v26 = vpop.eup %2087  ;;  %v854_v27 = vadd.f32 %v2086_v8, %v853_v22  ;;  %v1864_v30 = vmul.f32 -1.442695, %v754_v23 }
 0x11a   : > { %v2090_v36 = vpop.eup %2089  ;;  %v2656_v37 = vadd.f32 1.0, %v2088_v26 }
 0x11b   : > { %v866_v44 = vmul.f32 %v2090_v36, %v835_v9  ;;  %2091 = vpow2.f32 %v1864_v30  ;;  %v707_v49 = vpop.f32.mrf.mxu2  ;;  %v858_v53 = vsel %vm2660_vm2, %v2086_v8, %v854_v27  ;;  %vm871_vm4 = vweird.f32 %v2090_v36  ;;  %v606_v30 = vpop.f32.mrf.mxu0 }
 0x11c   : > { %2093 = vrcp.f32 %v2656_v37  ;;  %v708_v56 = vadd.f32 %v707_v49, %v2641_v45  ;;  %v863_v2 = vsel %vm860_vm3, %v862_v58, %v858_v53  ;;  %vm872_vm6 = vmor %vm870_vm5, %vm871_vm4  ;;  %v1107_v8 = vsub.f32 %v1091_v48, %v651_v59 }
 0x11d   : > { %v867_v51 = vsub.f32 1.0, %v866_v44  ;;  %v1122_v10 = vmul.f32 %v1106_v54, %v863_v2  ;;  %v2677_v27 = vpop.f32.mrf.mxu1  ;;  %vm885_vm9 = vweird.f32 %v2656_v37  ;;  %v1093_v54 = vunpack.c.l.bf16 %v299_v46 }
 0x11e   : > { %v756_v57 = vpop.f32.mrf.mxu3 }
 0x11f   : > { %v868_v63 = vmul.f32 %v2090_v36, %v867_v51  ;;  %v757_v0 = vadd.f32 %v756_v57, %v708_v56  ;;  %v1138_v23 = vadd.f32 %v1122_v10, %v649_v24  ;;  %v607_v24 = vadd.f32 %v606_v30, %v2605_v17 }
 0x120   : > { %v891_v51 = vand.u32 2147483648, %v2656_v37 }
 0x121   : > { %v2092_v3 = vpop.eup %2091  ;;  %v869_v4 = vadd.f32 %v2090_v36, %v868_v63  ;;  %v1865_v5 = vmul.f32 -1.442695, %v757_v0  ;;  %v656_v63 = vadd.f32 %v2650_v42, %v607_v24  ;;  %v610_v24 = vadd.f32 %v2603_v16, %v2605_v17 }
 0x122   : > { %v2094_v60 = vpop.eup %2093  ;;  %v2670_v6 = vadd.f32 1.0, %v2092_v3  ;;  %v892_v0 = vor.u32 1.1754944e-38, %v891_v51 }
 0x123   : > { %v881_v52 = vmul.f32 %v2094_v60, %v2656_v37  ;;  %v873_v11 = vsel %vm872_vm6, %v2090_v36, %v869_v4  ;;  %2095 = vpow2.f32 %v1865_v5  ;;  %v709_v9 = vpop.f32.mrf.mxu2  ;;  %v654_v36 = vadd.f32 %v2647_v1, %v605_v13 }
 0x124   : > { %2097 = vrcp.f32 %v2670_v6  ;;  %v878_v12 = vsel %vm875_vm7, %v877_v7, %v873_v11  ;;  %v710_v19 = vadd.f32 %v709_v9, %v2641_v45  ;;  %vm886_vm8 = vweird.f32 %v2094_v60 }
 0x125   : > { %v882_v14 = vsub.f32 1.0, %v881_v52  ;;  %v1123_v15 = vmul.f32 %v1107_v8, %v878_v12  ;;  %v889_v1 = vand.u32 2147483647, %v2656_v37  ;;  %vm887_vm10 = vmor %vm885_vm9, %vm886_vm8  ;;  %v1108_v58 = vsub.f32 %v1092_v38, %v654_v36  ;;  %v2693_v8 = vpop.f32.mrf.mxu1 }
 0x126   : > { %v758_v22 = vpop.f32.mrf.mxu3  ;;  %v904_v2 = vand.u32 2147483647, %v2670_v6  ;;  %v906_v3 = vand.u32 2147483648, %v2670_v6  ;;  %vm900_vm13 = vweird.f32 %v2670_v6  ;;  %v1109_v42 = vsub.f32 %v1093_v54, %v656_v63 }
 0x127   : > { %v1139_v26 = vadd.f32 %v1123_v15, %v651_v59  ;;  %v759_v29 = vadd.f32 %v758_v22, %v710_v19  ;;  %v883_v33 = vmul.f32 %v2094_v60, %v882_v14  ;;  %vm890_vm11 = vcmp.eq.f32.partialorder %v889_v1, 8.507059e+37 }
 0x128   : > { %vm905_vm15 = vcmp.eq.f32.partialorder %v904_v2, 8.507059e+37  ;;  %v907_v12 = vor.u32 1.1754944e-38, %v906_v3 }
 0x129   : > { %v2096_v31 = vpop.eup %2095  ;;  %v1866_v44 = vmul.f32 -1.442695, %v759_v29  ;;  %v1154_v41 = vpack.c.bf16 %v1139_v26, %v1138_v23  ;;  %v884_v48 = vadd.f32 %v2094_v60, %v883_v33 }
 0x12a   : > { %v2098_v49 = vpop.eup %2097  ;;  %v2681_v50 = vadd.f32 1.0, %v2096_v31  ;;  %v300_v31 = vld [vmem:[%s2533_s14 + $0x20] sm:$0xf] }
 0x12b   : > { %v896_v53 = vmul.f32 %v2098_v49, %v2670_v6  ;;  %2099 = vpow2.f32 %v1866_v44  ;;  %1238 = vmatmul.bf16.vlgmr.msrb.gmra.mxu0 %v1154_v41  ;;  %v712_v56 = vpop.f32.mrf.mxu2  ;;  %v888_v62 = vsel %vm887_vm10, %v2094_v60, %v884_v48  ;;  %vm901_vm12 = vweird.f32 %v2098_v49  ;;  %v301_v44 = vld [vmem:[%s2533_s14 + $0x28] sm:$0xf] }
 0x12c   : > { %2101 = vrcp.f32 %v2681_v50  ;;  %v713_v59 = vadd.f32 %v712_v56, %v2641_v45  ;;  %v893_v5 = vsel %vm890_vm11, %v892_v0, %v888_v62  ;;  %vm902_vm14 = vmor %vm900_vm13, %vm901_vm12  ;;  %vm915_vm1 = vweird.f32 %v2681_v50 }
 0x12d   : > { %v897_v57 = vsub.f32 1.0, %v896_v53  ;;  %v1124_v14 = vmul.f32 %v1108_v58, %v893_v5  ;;  %v921_v53 = vand.u32 2147483648, %v2681_v50  ;;  %v919_v54 = vand.u32 2147483647, %v2681_v50 }
 0x12e   : > { %v761_v61 = vpop.f32.mrf.mxu3  ;;  %v612_v56 = vadd.f32 %v2614_v21, %v2605_v17  ;;  %v1095_v58 = vunpack.c.l.bf16 %v301_v44  ;;  %v303_v44 = vld [vmem:[%s2533_s14 + $0x38] sm:$0xf] }
 0x12f   : > { %v762_v4 = vadd.f32 %v761_v61, %v713_v59  ;;  %v898_v37 = vmul.f32 %v2098_v49, %v897_v57  ;;  %v1140_v29 = vadd.f32 %v1124_v14, %v654_v36  ;;  %v2709_v36 = vpop.f32.mrf.mxu1  ;;  %v1094_v57 = vunpack.c.l.bf16 %v300_v31  ;;  %v302_v31 = vld [vmem:[%s2533_s14 + $0x30] sm:$0xf] }
 0x130   : > { %v659_v59 = vadd.f32 %v2666_v55, %v610_v24  ;;  %v661_v2 = vadd.f32 %v2677_v27, %v612_v56  ;;  %vm920_vm3 = vcmp.eq.f32.partialorder %v919_v54, 8.507059e+37  ;;  %v615_v24 = vadd.f32 %v2624_v28, %v2605_v17 }
 0x131   : > { %v2100_v7 = vpop.eup %2099  ;;  %v1867_v52 = vmul.f32 -1.442695, %v762_v4  ;;  %v899_v10 = vadd.f32 %v2098_v49, %v898_v37 }
 0x132   : > { %v2102_v60 = vpop.eup %2101  ;;  %v2696_v11 = vadd.f32 1.0, %v2100_v7 }
 0x133   : > { %v911_v13 = vmul.f32 %v2102_v60, %v2681_v50  ;;  %2103 = vpow2.f32 %v1867_v52  ;;  %v903_v9 = vsel %vm902_vm14, %v2098_v49, %v899_v10  ;;  %v714_v15 = vpop.f32.mrf.mxu2  ;;  %vm916_vm0 = vweird.f32 %v2102_v60 }
 0x134   : > { %2105 = vrcp.f32 %v2696_v11  ;;  %v908_v43 = vsel %vm905_vm15, %v907_v12, %v903_v9  ;;  %v715_v6 = vadd.f32 %v714_v15, %v2641_v45  ;;  %vm917_vm2 = vmor %vm915_vm1, %vm916_vm0  ;;  %v922_v50 = vor.u32 1.1754944e-38, %v921_v53 }
 0x135   : > { %v912_v19 = vsub.f32 1.0, %v911_v13  ;;  %v1125_v23 = vmul.f32 %v1109_v42, %v908_v43  ;;  %v934_v3 = vand.u32 2147483647, %v2696_v11  ;;  %v936_v21 = vand.u32 2147483648, %v2696_v11 }
 0x136   : > { %v763_v22 = vpop.f32.mrf.mxu3  ;;  %v1110_v52 = vsub.f32 %v1094_v57, %v659_v59  ;;  %vm930_vm5 = vweird.f32 %v2696_v11  ;;  %v617_v57 = vadd.f32 %v2633_v35, %v2605_v17 }
 0x137   : > { %v764_v26 = vadd.f32 %v763_v22, %v715_v6  ;;  %v1141_v30 = vadd.f32 %v1125_v23, %v656_v63  ;;  %v913_v33 = vmul.f32 %v2102_v60, %v912_v19  ;;  %vm935_vm7 = vcmp.eq.f32.partialorder %v934_v3, 8.507059e+37 }
 0x138   : > { %v937_v27 = vor.u32 1.1754944e-38, %v936_v21  ;;  %v666_v17 = vadd.f32 %v2709_v36, %v617_v57 }
 0x139   : > { %v2104_v38 = vpop.eup %2103  ;;  %v1868_v46 = vmul.f32 -1.442695, %v764_v26  ;;  %v1155_v41 = vpack.c.bf16 %v1141_v30, %v1140_v29  ;;  %v914_v48 = vadd.f32 %v2102_v60, %v913_v33 }
 0x13a   : > { %v2106_v49 = vpop.eup %2105  ;;  %v2705_v51 = vadd.f32 1.0, %v2104_v38 }
 0x13b   : > { %v926_v1 = vmul.f32 %v2106_v49, %v2696_v11  ;;  %2107 = vpow2.f32 %v1868_v46  ;;  %1243 = vmatmul.bf16.gmra.mxu0 %v1155_v41  ;;  %v717_v16 = vpop.f32.mrf.mxu2  ;;  %v918_v0 = vsel %vm917_vm2, %v2102_v60, %v914_v48  ;;  %vm931_vm4 = vweird.f32 %v2106_v49  ;;  %v2727_v11 = vpop.f32.mrf.mxu1 }
 0x13c   : > { %2109 = vrcp.f32 %v2705_v51  ;;  %v718_v62 = vadd.f32 %v717_v16, %v2641_v45  ;;  %v923_v5 = vsel %vm920_vm3, %v922_v50, %v918_v0  ;;  %v1111_v60 = vsub.f32 %v1095_v58, %v661_v2  ;;  %vm932_vm6 = vmor %vm930_vm5, %vm931_vm4 }
 0x13d   : > { %v927_v61 = vsub.f32 1.0, %v926_v1  ;;  %v1126_v14 = vmul.f32 %v1110_v52, %v923_v5  ;;  %v951_v1 = vand.u32 2147483648, %v2705_v51  ;;  %vm945_vm9 = vweird.f32 %v2705_v51 }
 0x13e   : > { %v766_v63 = vpop.f32.mrf.mxu3  ;;  %v949_v56 = vand.u32 2147483647, %v2705_v51  ;;  %v1096_v58 = vunpack.c.l.bf16 %v302_v31  ;;  %v1097_v16 = vunpack.c.l.bf16 %v303_v44 }
 0x13f   : > { %v767_v4 = vadd.f32 %v766_v63, %v718_v62  ;;  %v928_v37 = vmul.f32 %v2106_v49, %v927_v61  ;;  %v1142_v29 = vadd.f32 %v1126_v14, %v659_v59  ;;  %v664_v61 = vadd.f32 %v2693_v8, %v615_v24 }
 0x140   : > { %v952_v35 = vor.u32 1.1754944e-38, %v951_v1  ;;  %vm950_vm11 = vcmp.eq.f32.partialorder %v949_v56, 8.507059e+37 }
 0x141   : > { %v2108_v7 = vpop.eup %2107  ;;  %v1869_v55 = vmul.f32 -1.442695, %v767_v4  ;;  %v929_v10 = vadd.f32 %v2106_v49, %v928_v37  ;;  %v1112_v5 = vsub.f32 %v1096_v58, %v664_v61  ;;  %v669_v58 = vadd.f32 %v2727_v11, %v2609_v18 }
 0x142   : > { %v2110_v42 = vpop.eup %2109  ;;  %v2723_v12 = vadd.f32 1.0, %v2108_v7 }
 0x143   : > { %v941_v13 = vmul.f32 %v2110_v42, %v2705_v51  ;;  %2111 = vpow2.f32 %v1869_v55  ;;  %v933_v9 = vsel %vm932_vm6, %v2106_v49, %v929_v10  ;;  %v719_v15 = vpop.f32.mrf.mxu2  ;;  %vm946_vm8 = vweird.f32 %v2110_v42  ;;  %v670_v3 = vpop.f32.mrf.mxu1 }
 0x144   : > { %2113 = vrcp.f32 %v2723_v12  ;;  %v938_v43 = vsel %vm935_vm7, %v937_v27, %v933_v9  ;;  %v720_v6 = vadd.f32 %v719_v15, %v2641_v45  ;;  %vm2744_vm10 = vmor %vm945_vm9, %vm946_vm8  ;;  %v966_v50 = vand.u32 2147483648, %v2723_v12 }
 0x145   : > { %v942_v19 = vsub.f32 1.0, %v941_v13  ;;  %v1127_v23 = vmul.f32 %v1111_v60, %v938_v43  ;;  %vm960_vm13 = vweird.f32 %v2723_v12  ;;  %v1113_v10 = vsub.f32 %v1097_v16, %v666_v17 }
 0x146   : > { %v768_v22 = vpop.f32.mrf.mxu3 }
 0x147   : > { %v769_v26 = vadd.f32 %v768_v22, %v720_v6  ;;  %v1143_v30 = vadd.f32 %v1127_v23, %v661_v2  ;;  %v943_v33 = vmul.f32 %v2110_v42, %v942_v19  ;;  %v964_v2 = vand.u32 2147483647, %v2723_v12 }
 0x149   : > { %v2112_v38 = vpop.eup %2111  ;;  %v1870_v46 = vmul.f32 -1.442695, %v769_v26  ;;  %v1156_v41 = vpack.c.bf16 %v1143_v30, %v1142_v29  ;;  %v944_v48 = vadd.f32 %v2110_v42, %v943_v33  ;;  %vm965_vm15 = vcmp.eq.f32.partialorder %v964_v2, 8.507059e+37  ;;  %v304_v30 = vld [vmem:[%s2533_s14 + $0x40] sm:$0xf] }
 0x14a   : > { %v2114_v49 = vpop.eup %2113  ;;  %v2734_v53 = vadd.f32 1.0, %v2112_v38  ;;  %v305_v33 = vld [vmem:[%s2533_s14 + $0x48] sm:$0xf] }
 0x14b   : > { %v956_v54 = vmul.f32 %v2114_v49, %v2723_v12  ;;  %2115 = vpow2.f32 %v1870_v46  ;;  %1248 = vmatmul.bf16.gmra.mxu0 %v1156_v41  ;;  %v722_v28 = vpop.f32.mrf.mxu2  ;;  %v948_v51 = vsel %vm2744_vm10, %v2110_v42, %v944_v48  ;;  %vm961_vm12 = vweird.f32 %v2114_v49  ;;  %v2763_v38 = vpop.f32.mrf.mxu1 }
 0x14c   : > { %2117 = vrcp.f32 %v2734_v53  ;;  %v723_v63 = vadd.f32 %v722_v28, %v2641_v45  ;;  %v953_v8 = vsel %vm950_vm11, %v952_v35, %v948_v51  ;;  %vm962_vm14 = vmor %vm960_vm13, %vm961_vm12  ;;  %v967_v42 = vor.u32 1.1754944e-38, %v966_v50 }
 0x14d   : > { %v957_v62 = vsub.f32 1.0, %v956_v54  ;;  %v1128_v13 = vmul.f32 %v1112_v5, %v953_v8  ;;  %vm975_vm1 = vweird.f32 %v2734_v53  ;;  %v979_v1 = vand.u32 2147483647, %v2734_v53 }
 0x14e   : > { %v771_v0 = vpop.f32.mrf.mxu3  ;;  %v1098_v54 = vunpack.c.l.bf16 %v304_v30  ;;  %v1099_v56 = vunpack.c.l.bf16 %v305_v33 }
 0x14f   : > { %v772_v21 = vadd.f32 %v771_v0, %v723_v63  ;;  %v958_v4 = vmul.f32 %v2114_v49, %v957_v62  ;;  %v1144_v22 = vadd.f32 %v1128_v13, %v664_v61  ;;  %v671_v62 = vadd.f32 %v670_v3, %v2619_v25 }
 0x150   : > { %vm980_vm3 = vcmp.eq.f32.partialorder %v979_v1, 8.507059e+37  ;;  %v1114_v50 = vsub.f32 %v1098_v54, %v669_v58 }
 0x151   : > { %v2116_v37 = vpop.eup %2115  ;;  %v1871_v7 = vmul.f32 -1.442695, %v772_v21  ;;  %v959_v52 = vadd.f32 %v2114_v49, %v958_v4  ;;  %v1115_v4 = vsub.f32 %v1099_v56, %v671_v62 }
 0x152   : > { %v2118_v55 = vpop.eup %2117  ;;  %v2756_v36 = vadd.f32 1.0, %v2116_v37 }
 0x153   : > { %v971_v60 = vmul.f32 %v2118_v55, %v2734_v53  ;;  %2119 = vpow2.f32 %v1871_v7  ;;  %v963_v27 = vsel %vm962_vm14, %v2114_v49, %v959_v52  ;;  %v724_v9 = vpop.f32.mrf.mxu2  ;;  %vm976_vm0 = vweird.f32 %v2118_v55  ;;  %v675_v37 = vpop.f32.mrf.mxu1 }
 0x154   : > { %2121 = vrcp.f32 %v2756_v36  ;;  %v968_v14 = vsel %vm965_vm15, %v967_v42, %v963_v27  ;;  %v725_v12 = vadd.f32 %v724_v9, %v2641_v45  ;;  %v981_v49 = vand.u32 2147483648, %v2734_v53  ;;  %vm977_vm2 = vmor %vm975_vm1, %vm976_vm0 }
 0x155   : > { %v972_v15 = vsub.f32 1.0, %v971_v60  ;;  %v1129_v19 = vmul.f32 %v1113_v10, %v968_v14  ;;  %v994_v0 = vand.u32 2147483647, %v2756_v36  ;;  %v996_v53 = vand.u32 2147483648, %v2756_v36 }
 0x156   : > { %v773_v43 = vpop.f32.mrf.mxu3  ;;  %v982_v63 = vor.u32 1.1754944e-38, %v981_v49  ;;  %vm990_vm5 = vweird.f32 %v2756_v36  ;;  %v674_v49 = vadd.f32 %v2763_v38, %v2628_v32 }
 0x157   : > { %v774_v6 = vadd.f32 %v773_v43, %v725_v12  ;;  %v1145_v23 = vadd.f32 %v1129_v19, %v666_v17  ;;  %v973_v26 = vmul.f32 %v2118_v55, %v972_v15  ;;  %vm995_vm7 = vcmp.eq.f32.partialorder %v994_v0, 8.507059e+37  ;;  %v306_v12 = vld [vmem:[%s2533_s14 + $0x50] sm:$0xf]  ;;  %v307_v43 = vld [vmem:[%s2533_s14 + $0x58] sm:$0xf] }
 0x158   : > { %v997_v25 = vor.u32 1.1754944e-38, %v996_v53 }
 0x159   : > { %v2120_v29 = vpop.eup %2119  ;;  %v1872_v31 = vmul.f32 -1.442695, %v774_v6  ;;  %v1157_v44 = vpack.c.bf16 %v1145_v23, %v1144_v22  ;;  %v974_v46 = vadd.f32 %v2118_v55, %v973_v26 }
 0x15a   : > { %v2122_v41 = vpop.eup %2121  ;;  %v2765_v48 = vadd.f32 1.0, %v2120_v29 }
 0x15b   : > { %v986_v24 = vmul.f32 %v2122_v41, %v2756_v36  ;;  %2123 = vpow2.f32 %v1872_v31  ;;  %1253 = vmatmul.bf16.gmra.mxu0 %v1157_v44  ;;  %v727_v57 = vpop.f32.mrf.mxu2  ;;  %v978_v61 = vsel %vm977_vm2, %v2118_v55, %v974_v46  ;;  %vm991_vm4 = vweird.f32 %v2122_v41  ;;  %v678_v1 = vpop.f32.mrf.mxu1 }
 0x15c   : > { %2125 = vrcp.f32 %v2765_v48  ;;  %v728_v28 = vadd.f32 %v727_v57, %v2641_v45  ;;  %v983_v35 = vsel %vm980_vm3, %v982_v63, %v978_v61  ;;  %vm992_vm6 = vmor %vm990_vm5, %vm991_vm4  ;;  %v1011_v29 = vand.u32 2147483648, %v2765_v48 }
 0x15d   : > { %v987_v16 = vsub.f32 1.0, %v986_v24  ;;  %v1130_v7 = vmul.f32 %v1114_v50, %v983_v35  ;;  %vm1005_vm9 = vweird.f32 %v2765_v48  ;;  %v1009_v33 = vand.u32 2147483647, %v2765_v48 }
 0x15e   : > { %v776_v59 = vpop.f32.mrf.mxu3  ;;  %v1100_v31 = vunpack.c.l.bf16 %v306_v12  ;;  %v1101_v44 = vunpack.c.l.bf16 %v307_v43  ;;  %v676_v57 = vadd.f32 %v675_v37, %v2636_v39  ;;  %v679_v12 = vadd.f32 %v678_v1, %v2612_v20 }
 0x15f   : > { %v777_v51 = vadd.f32 %v776_v59, %v728_v28  ;;  %v988_v17 = vmul.f32 %v2122_v41, %v987_v16  ;;  %v1146_v13 = vadd.f32 %v1130_v7, %v669_v58  ;;  %v1012_v58 = vor.u32 1.1754944e-38, %v1011_v29 }
 0x160   : > { %vm1010_vm11 = vcmp.eq.f32.partialorder %v1009_v33, 8.507059e+37 }
 0x161   : > { %v2124_v2 = vpop.eup %2123  ;;  %v1873_v18 = vmul.f32 -1.442695, %v777_v51  ;;  %v989_v11 = vadd.f32 %v2122_v41, %v988_v17  ;;  %v1117_v51 = vsub.f32 %v1101_v44, %v676_v57 }
 0x162   : > { %v2126_v21 = vpop.eup %2125  ;;  %v2779_v8 = vadd.f32 1.0, %v2124_v2 }
 0x163   : > { %v1001_v3 = vmul.f32 %v2126_v21, %v2765_v48  ;;  %2127 = vpow2.f32 %v1873_v18  ;;  %v993_v5 = vsel %vm992_vm6, %v2122_v41, %v989_v11  ;;  %v729_v52 = vpop.f32.mrf.mxu2  ;;  %vm1006_vm8 = vweird.f32 %v2126_v21 }
 0x164   : > { %2129 = vrcp.f32 %v2779_v8  ;;  %v998_v55 = vsel %vm995_vm7, %v997_v25, %v993_v5  ;;  %v730_v36 = vadd.f32 %v729_v52, %v2641_v45  ;;  %vm2793_vm10 = vmor %vm1005_vm9, %vm1006_vm8  ;;  %v1024_v16 = vand.u32 2147483647, %v2779_v8 }
 0x165   : > { %v1002_v10 = vsub.f32 1.0, %v1001_v3  ;;  %v1131_v60 = vmul.f32 %v1115_v4, %v998_v55  ;;  %v1026_v28 = vand.u32 2147483648, %v2779_v8  ;;  %vm1020_vm13 = vweird.f32 %v2779_v8  ;;  %v680_v3 = vpop.f32.mrf.mxu1 }
 0x166   : > { %v778_v42 = vpop.f32.mrf.mxu3  ;;  %vm1025_vm15 = vcmp.eq.f32.partialorder %v1024_v16, 8.507059e+37 }
 0x167   : > { %v779_v27 = vadd.f32 %v778_v42, %v730_v36  ;;  %v1147_v9 = vadd.f32 %v1131_v60, %v671_v62  ;;  %v1003_v14 = vmul.f32 %v2126_v21, %v1002_v10  ;;  %v1116_v62 = vsub.f32 %v1100_v31, %v674_v49 }
 0x168   : > { %v1027_v39 = vor.u32 1.1754944e-38, %v1026_v28 }
 0x169   : > { %v2128_v15 = vpop.eup %2127  ;;  %v1874_v19 = vmul.f32 -1.442695, %v779_v27  ;;  %v1158_v6 = vpack.c.bf16 %v1147_v9, %v1146_v13  ;;  %v1004_v22 = vadd.f32 %v2126_v21, %v1003_v14  ;;  %v308_v27 = vld [vmem:[%s2533_s14 + $0x60] sm:$0xf] }
 0x16a   : > { %v2130_v23 = vpop.eup %2129  ;;  %v2786_v26 = vadd.f32 1.0, %v2128_v15  ;;  %v1102_v43 = vunpack.c.l.bf16 %v308_v27 }
 0x16b   : > { %v1016_v30 = vmul.f32 %v2130_v23, %v2779_v8  ;;  %2131 = vpow2.f32 %v1874_v19  ;;  %1258 = vmatmul.bf16.gmra.mxu0 %v1158_v6  ;;  %v732_v46 = vpop.f32.mrf.mxu2  ;;  %v1008_v48 = vsel %vm2793_vm10, %v2126_v21, %v1004_v22  ;;  %vm1021_vm12 = vweird.f32 %v2130_v23 }
 0x16c   : > { %2133 = vrcp.f32 %v2786_v26  ;;  %v733_v54 = vadd.f32 %v732_v46, %v2641_v45  ;;  %v1013_v32 = vsel %vm1010_vm11, %v1012_v58, %v1008_v48  ;;  %vm1022_vm14 = vmor %vm1020_vm13, %vm1021_vm12  ;;  %v1041_v9 = vand.u32 2147483648, %v2786_v26 }
 0x16d   : > { %v1017_v24 = vsub.f32 1.0, %v1016_v30  ;;  %v1132_v50 = vmul.f32 %v1116_v62, %v1013_v32  ;;  %vm1035_vm1 = vweird.f32 %v2786_v26  ;;  %v1039_v15 = vand.u32 2147483647, %v2786_v26  ;;  %v683_v41 = vpop.f32.mrf.mxu1 }
 0x16e   : > { %v781_v56 = vpop.f32.mrf.mxu3  ;;  %v681_v22 = vadd.f32 %v680_v3, %v2622_v47  ;;  %v1042_v29 = vor.u32 1.1754944e-38, %v1041_v9  ;;  %v1118_v46 = vsub.f32 %v1102_v43, %v679_v12 }
 0x16f   : > { %v782_v59 = vadd.f32 %v781_v56, %v733_v54  ;;  %v1018_v61 = vmul.f32 %v2130_v23, %v1017_v24  ;;  %v1148_v5 = vadd.f32 %v1132_v50, %v674_v49  ;;  %vm1040_vm3 = vcmp.eq.f32.partialorder %v1039_v15, 8.507059e+37 }
 0x171   : > { %v2132_v38 = vpop.eup %2131  ;;  %v1875_v63 = vmul.f32 -1.442695, %v782_v59  ;;  %v1019_v0 = vadd.f32 %v2130_v23, %v1018_v61 }
 0x172   : > { %v2134_v53 = vpop.eup %2133  ;;  %v2806_v17 = vadd.f32 1.0, %v2132_v38 }
 0x173   : > { %v1031_v35 = vmul.f32 %v2134_v53, %v2786_v26  ;;  %2135 = vpow2.f32 %v1875_v63  ;;  %v1023_v2 = vsel %vm1022_vm14, %v2130_v23, %v1019_v0  ;;  %v734_v18 = vpop.f32.mrf.mxu2  ;;  %vm1036_vm0 = vweird.f32 %v2134_v53  ;;  %v310_v63 = vld [vmem:[%s2533_s14 + $0x70] sm:$0xf] }
 0x174   : > { %2137 = vrcp.f32 %v2806_v17  ;;  %v1028_v11 = vsel %vm1025_vm15, %v1027_v39, %v1023_v2  ;;  %v735_v4 = vadd.f32 %v734_v18, %v2641_v45  ;;  %v309_v45 = vld [vmem:[%s2533_s14 + $0x68] sm:$0xf]  ;;  %vm1037_vm2 = vmor %vm1035_vm1, %vm1036_vm0  ;;  %v1056_v30 = vand.u32 2147483648, %v2806_v17 }
 0x175   : > { %v1032_v21 = vsub.f32 1.0, %v1031_v35  ;;  %v1133_v8 = vmul.f32 %v1117_v51, %v1028_v11  ;;  %v1103_v23 = vunpack.c.l.bf16 %v309_v45  ;;  %v1054_v31 = vand.u32 2147483647, %v2806_v17  ;;  %v685_v51 = vpop.f32.mrf.mxu1 }
 0x176   : > { %v783_v25 = vpop.f32.mrf.mxu3  ;;  %vm1050_vm5 = vweird.f32 %v2806_v17  ;;  %v1057_v47 = vor.u32 1.1754944e-38, %v1056_v30  ;;  %v684_v35 = vadd.f32 %v683_v41, %v2631_v34  ;;  %v1104_v2 = vunpack.c.l.bf16 %v310_v63 }
 0x177   : > { %v784_v37 = vadd.f32 %v783_v25, %v735_v4  ;;  %v1149_v7 = vadd.f32 %v1133_v8, %v676_v57  ;;  %v1033_v52 = vmul.f32 %v2134_v53, %v1032_v21  ;;  %v1119_v24 = vsub.f32 %v1103_v23, %v681_v22 }
 0x178   : > { %vm1055_vm7 = vcmp.eq.f32.partialorder %v1054_v31, 8.507059e+37  ;;  %v686_v11 = vadd.f32 %v685_v51, %v2639_v40 }
 0x179   : > { %v2136_v55 = vpop.eup %2135  ;;  %v1876_v10 = vmul.f32 -1.442695, %v784_v37  ;;  %v1159_v36 = vpack.c.bf16 %v1149_v7, %v1148_v5  ;;  %v1034_v42 = vadd.f32 %v2134_v53, %v1033_v52  ;;  %v1120_v5 = vsub.f32 %v1104_v2, %v684_v35 }
 0x17a   : > { %v2138_v60 = vpop.eup %2137  ;;  %v2812_v13 = vadd.f32 1.0, %v2136_v55 }
 0x17b   : > { %v1046_v14 = vmul.f32 %v2138_v60, %v2806_v17  ;;  %2139 = vpow2.f32 %v1876_v10  ;;  %1263 = vmatmul.bf16.gmra.mxu0 %v1159_v36  ;;  %v1038_v6 = vsel %vm1037_vm2, %v2134_v53, %v1034_v42  ;;  %vm1051_vm4 = vweird.f32 %v2138_v60  ;;  %v311_v53 = vld [vmem:[%s2533_s14 + $0x78] sm:$0xf] }
 0x17c   : > { %2141 = vrcp.f32 %v2812_v13  ;;  %v1043_v26 = vsel %vm1040_vm3, %v1042_v29, %v1038_v6  ;;  %vm1052_vm6 = vmor %vm1050_vm5, %vm1051_vm4  ;;  %v1071_v0 = vand.u32 2147483648, %v2812_v13  ;;  %vm1065_vm9 = vweird.f32 %v2812_v13 }
 0x17d   : > { %v1047_v19 = vsub.f32 1.0, %v1046_v14  ;;  %v1134_v48 = vmul.f32 %v1118_v46, %v1043_v26  ;;  %v1069_v39 = vand.u32 2147483647, %v2812_v13  ;;  %v1105_v21 = vunpack.c.l.bf16 %v311_v53 }
 0x17e   : > { %v1072_v4 = vor.u32 1.1754944e-38, %v1071_v0 }
 0x17f   : > { %v1048_v33 = vmul.f32 %v2138_v60, %v1047_v19  ;;  %v1150_v28 = vadd.f32 %v1134_v48, %v679_v12  ;;  %vm1070_vm11 = vcmp.eq.f32.partialorder %v1069_v39, 8.507059e+37  ;;  %v1121_v55 = vsub.f32 %v1105_v21, %v686_v11 }
 0x181   : > { %v2140_v44 = vpop.eup %2139  ;;  %v1049_v49 = vadd.f32 %v2138_v60, %v1048_v33 }
 0x182   : > { %v2142_v20 = vpop.eup %2141  ;;  %v849_v1 = vadd.f32 1.0, %v2140_v44 }
 0x183   : > { %v1061_v54 = vmul.f32 %v2142_v20, %v2812_v13  ;;  %v1053_v56 = vsel %vm1052_vm6, %v2138_v60, %v1049_v49  ;;  %vm1066_vm8 = vweird.f32 %v2142_v20  ;;  %v2836_v13 = vld [vmem:[%s2992_s4] ss:$0 sm:$0xff] }
 0x184   : > { %2143 = vrcp.f32 %v849_v1  ;;  %v1058_v57 = vsel %vm1055_vm7, %v1057_v47, %v1053_v56  ;;  %vm1067_vm10 = vmor %vm1065_vm9, %vm1066_vm8  ;;  %v1086_v8 = vand.u32 2147483648, %v849_v1  ;;  %v1084_v3 = vand.u32 2147483647, %v849_v1 }
 0x185   : > { %v1062_v58 = vsub.f32 1.0, %v1061_v54  ;;  %v1135_v16 = vmul.f32 %v1119_v24, %v1058_v57  ;;  %vm1080_vm13 = vweird.f32 %v849_v1 }
 0x186   : > { %v1087_v52 = vor.u32 1.1754944e-38, %v1086_v8  ;;  %vm1085_vm15 = vcmp.eq.f32.partialorder %v1084_v3, 8.507059e+37 }
 0x187   : > { %v1151_v59 = vadd.f32 %v1135_v16, %v681_v22  ;;  %v1063_v61 = vmul.f32 %v2142_v20, %v1062_v58 }
 0x189   : > { %v1160_v32 = vpack.c.bf16 %v1151_v59, %v1150_v28  ;;  %v1064_v38 = vadd.f32 %v2142_v20, %v1063_v61 }
 0x18a   : > { %v2144_v62 = vpop.eup %2143 }
 0x18b   : > { %v1076_v17 = vmul.f32 %v2144_v62, %v849_v1  ;;  %1268 = vmatmul.bf16.gmra.mxu0 %v1160_v32  ;;  %v1068_v18 = vsel %vm1067_vm10, %v2142_v20, %v1064_v38  ;;  %vm1081_vm12 = vweird.f32 %v2144_v62 }
 0x18c   : > { %v1073_v37 = vsel %vm1070_vm11, %v1072_v4, %v1068_v18  ;;  %vm1082_vm14 = vmor %vm1080_vm13, %vm1081_vm12 }
 0x18d   : > { %v1077_v50 = vsub.f32 1.0, %v1076_v17  ;;  %v1136_v10 = vmul.f32 %v1120_v5, %v1073_v37 }
 0x18f   : > { %v1078_v25 = vmul.f32 %v2144_v62, %v1077_v50  ;;  %v1152_v40 = vadd.f32 %v1136_v10, %v684_v35 }
 0x191   : > { %v1079_v7 = vadd.f32 %v2144_v62, %v1078_v25 }
 0x193   : > { %v1083_v34 = vsel %vm1082_vm14, %v2144_v62, %v1079_v7 }
 0x194   : > { %v1088_v36 = vsel %vm1085_vm15, %v1087_v52, %v1083_v34 }
 0x195   : > { %v1137_v42 = vmul.f32 %v1121_v55, %v1088_v36 }
 0x197   : > { %v1153_v60 = vadd.f32 %v1137_v42, %v686_v11 }
 0x199   : > { %v1161_v27 = vpack.c.bf16 %v1153_v60, %v1152_v40 }
 0x19b   : > { %1273 = vmatmul.bf16.gmra.mxu0 %v1161_v27 }
 0x1a8   : > { %v1239_v9 = vpop.f32.mrf.mxu0 }
 0x1a9   : > { %v2839_v45 = vadd.f32 %v2836_v13, %v1239_v9 }
 0x1ab   : > { %v1279_v14 = vmul.f32 %v2839_v45, %v2839_v45 }
 0x1ad   : > { %1295 = vadd.xlane.f32.xlu0 %v1279_v14 }
 0x1b0   : > { %v1241_v15 = vpop.f32.mrf.mxu0 }
 0x1b1   : > { %v2844_v12 = vadd.f32 %v2836_v13, %v1241_v15 }
 0x1b3   : > { %v1280_v43 = vmul.f32 %v2844_v12, %v2844_v12 }
 0x1b5   : > { %1297 = vadd.xlane.f32.xlu0 %v1280_v43 }
 0x1b8   : > { %v1244_v19 = vpop.f32.mrf.mxu0 }
 0x1b9   : > { %v2849_v6 = vadd.f32 %v2836_v13, %v1244_v19 }
 0x1bb   : > { %v1281_v22 = vmul.f32 %v2849_v6, %v2849_v6 }
 0x1bd   : > { %1299 = vadd.xlane.f32.xlu1 %v1281_v22 }
 0x1c0   : > { %v1246_v23 = vpop.f32.mrf.mxu0 }
 0x1c1   : > { %v2854_v29 = vadd.f32 %v2836_v13, %v1246_v23 }
 0x1c3   : > { %v1282_v30 = vmul.f32 %v2854_v29, %v2854_v29 }
 0x1c5   : > { %1301 = vadd.xlane.f32.xlu1 %v1282_v30 }
 0x1c8   : > { %v1249_v33 = vpop.f32.mrf.mxu0 }
 0x1c9   : > { %v2859_v31 = vadd.f32 %v2836_v13, %v1249_v33 }
 0x1cb   : > { %v1283_v26 = vmul.f32 %v2859_v31, %v2859_v31 }
 0x1cd   : > { %1303 = vadd.xlane.f32.xlu2 %v1283_v26 }
 0x1d0   : > { %v1251_v44 = vpop.f32.mrf.mxu0 }
 0x1d1   : > { %v2864_v46 = vadd.f32 %v2836_v13, %v1251_v44 }
 0x1d3   : > { %v1284_v41 = vmul.f32 %v2864_v46, %v2864_v46 }
 0x1d5   : > { %1305 = vadd.xlane.f32.xlu2 %v1284_v41 }
 0x1d8   : > { %v1254_v49 = vpop.f32.mrf.mxu0 }
 0x1d9   : > { %v2869_v20 = vadd.f32 %v2836_v13, %v1254_v49 }
 0x1db   : > { %v1285_v24 = vmul.f32 %v2869_v20, %v2869_v20 }
 0x1dd   : > { %1307 = vadd.xlane.f32.xlu0 %v1285_v24 }
 0x1e0   : > { %v1256_v1 = vpop.f32.mrf.mxu0 }
 0x1e1   : > { %v2874_v47 = vadd.f32 %v2836_v13, %v1256_v1 }
 0x1e3   : > { %v1286_v54 = vmul.f32 %v2874_v47, %v2874_v47 }
 0x1e5   : > { %1309 = vadd.xlane.f32.xlu1 %v1286_v54 }
 0x1e8   : > { %v1259_v56 = vpop.f32.mrf.mxu0 }
 0x1e9   : > { %v2879_v48 = vadd.f32 %v2836_v13, %v1259_v56 }
 0x1eb   : > { %v1287_v57 = vmul.f32 %v2879_v48, %v2879_v48 }
 0x1ed   : > { %1311 = vadd.xlane.f32.xlu2 %v1287_v57 }
 0x1f0   : > { %v1261_v58 = vpop.f32.mrf.mxu0 }
 0x1f1   : > { %v2884_v16 = vadd.f32 %v2836_v13, %v1261_v58 }
 0x1f3   : > { %v1288_v28 = vmul.f32 %v2884_v16, %v2884_v16 }
 0x1f5   : > { %1313 = vadd.xlane.f32.xlu0 %v1288_v28 }
 0x1f8   : > { %v1264_v59 = vpop.f32.mrf.mxu0 }
 0x1f9   : > { %v2889_v61 = vadd.f32 %v2836_v13, %v1264_v59 }
 0x1fb   : > { %v1289_v32 = vmul.f32 %v2889_v61, %v2889_v61 }
 0x1fd   : > { %1315 = vadd.xlane.f32.xlu1 %v1289_v32 }
 0x200   : > { %v1266_v38 = vpop.f32.mrf.mxu0 }
 0x201   : > { %v2894_v62 = vadd.f32 %v2836_v13, %v1266_v38 }
 0x203   : > { %v1290_v63 = vmul.f32 %v2894_v62, %v2894_v62 }
 0x205   : > { %1317 = vadd.xlane.f32.xlu2 %v1290_v63 }
 0x208   : > { %v1269_v0 = vpop.f32.mrf.mxu0 }
 0x209   : > { %v2899_v53 = vadd.f32 %v2836_v13, %v1269_v0 }
 0x20b   : > { %v1291_v51 = vmul.f32 %v2899_v53, %v2899_v53 }
 0x20d   : > { %1319 = vadd.xlane.f32.xlu0 %v1291_v51 }
 0x210   : > { %v1271_v17 = vpop.f32.mrf.mxu0 }
 0x211   : > { %v2904_v39 = vadd.f32 %v2836_v13, %v1271_v17 }
 0x213   : > { %v1292_v35 = vmul.f32 %v2904_v39, %v2904_v39 }
 0x215   : > { %1321 = vadd.xlane.f32.xlu1 %v1292_v35 }
 0x218   : > { %v1274_v2 = vpop.f32.mrf.mxu0 }
 0x219   : > { %v2909_v50 = vadd.f32 %v2836_v13, %v1274_v2 }
 0x21b   : > { %v1293_v18 = vmul.f32 %v2909_v50, %v2909_v50 }
 0x21d   : > { %1323 = vadd.xlane.f32.xlu2 %v1293_v18 }
 0x220   : > { %v1276_v11 = vpop.f32.mrf.mxu0  ;;  %v1296_v21 = vpop.xlane.xlu0 %1295 }
 0x221   : > { %v2914_v4 = vadd.f32 %v2836_v13, %v1276_v11  ;;  %v1327_v8 = vmax.f32 %v1296_v21, 1e-24 }
 0x223   : > { %2145 = vrsqrt.f32 %v1327_v8  ;;  %v1294_v25 = vmul.f32 %v2914_v4, %v2914_v4  ;;  %vm1349_vm1 = vweird.f32 %v1327_v8 }
 0x225   : > { %1325 = vadd.xlane.f32.xlu0 %v1294_v25 }
 0x228   : > { %v1298_v3 = vpop.xlane.xlu0 %1297 }
 0x229   : > { %v2146_v37 = vpop.eup %2145  ;;  %v1328_v5 = vmax.f32 %v1298_v3, 1e-24 }
 0x22a   : > { %v1344_v7 = vmul.f32 %v2146_v37, %v1327_v8  ;;  %vm1350_vm0 = vweird.f32 %v2146_v37 }
 0x22b   : > { %2147 = vrsqrt.f32 %v1328_v5  ;;  %vm1351_vm2 = vmor %vm1349_vm1, %vm1350_vm0  ;;  %vm1359_vm4 = vweird.f32 %v1328_v5 }
 0x22c   : > { %v1345_v52 = vmul.f32 %v2146_v37, %v1344_v7 }
 0x22e   : > { %v1346_v55 = vmul.f32 0.5, %v1345_v52 }
 0x230   : > { %v1347_v34 = vsub.f32 1.5, %v1346_v55  ;;  %v1300_v10 = vpop.xlane.xlu1 %1299 }
 0x231   : > { %v2148_v36 = vpop.eup %2147  ;;  %v1329_v42 = vmax.f32 %v1300_v10, 1e-24 }
 0x232   : > { %v1348_v40 = vmul.f32 %v2146_v37, %v1347_v34  ;;  %v1354_v60 = vmul.f32 %v2148_v36, %v1328_v5  ;;  %vm1360_vm3 = vweird.f32 %v2148_v36 }
 0x233   : > { %2149 = vrsqrt.f32 %v1329_v42  ;;  %vm1361_vm5 = vmor %vm1359_vm4, %vm1360_vm3  ;;  %vm1369_vm7 = vweird.f32 %v1329_v42 }
 0x234   : > { %v1352_v27 = vsel %vm1351_vm2, %v2146_v37, %v1348_v40  ;;  %v1355_v13 = vmul.f32 %v2148_v36, %v1354_v60 }
 0x235   : > { %v1503_v9 = vmul.f32 %v1352_v27, %v2839_v45 }
 0x236   : > { %v1356_v14 = vmul.f32 0.5, %v1355_v13 }
 0x237   : > { %1519 = vst [vmem:[%s2921_s12] sm:$0xff] %v1503_v9 }
 0x238   : > { %v1357_v15 = vsub.f32 1.5, %v1356_v14  ;;  %v1302_v43 = vpop.xlane.xlu1 %1301 }
 0x239   : > { %v2150_v19 = vpop.eup %2149  ;;  %v1330_v22 = vmax.f32 %v1302_v43, 1e-24 }
 0x23a   : > { %v1358_v23 = vmul.f32 %v2148_v36, %v1357_v15  ;;  %v1364_v30 = vmul.f32 %v2150_v19, %v1329_v42  ;;  %vm1370_vm6 = vweird.f32 %v2150_v19 }
 0x23b   : > { %2151 = vrsqrt.f32 %v1330_v22  ;;  %vm1371_vm8 = vmor %vm1369_vm7, %vm1370_vm6  ;;  %vm1379_vm10 = vweird.f32 %v1330_v22 }
 0x23c   : > { %v1362_v33 = vsel %vm1361_vm5, %v2148_v36, %v1358_v23  ;;  %v1365_v26 = vmul.f32 %v2150_v19, %v1364_v30 }
 0x23d   : > { %v1504_v45 = vmul.f32 %v1362_v33, %v2844_v12 }
 0x23e   : > { %v1366_v44 = vmul.f32 0.5, %v1365_v26 }
 0x23f   : > { %1520 = vst [vmem:[%s2921_s12 + $0x8] sm:$0xff] %v1504_v45 }
 0x240   : > { %v1367_v41 = vsub.f32 1.5, %v1366_v44  ;;  %v1304_v49 = vpop.xlane.xlu2 %1303 }
 0x241   : > { %v2152_v24 = vpop.eup %2151  ;;  %v1331_v1 = vmax.f32 %v1304_v49, 1e-24 }
 0x242   : > { %v1368_v54 = vmul.f32 %v2150_v19, %v1367_v41  ;;  %v1374_v56 = vmul.f32 %v2152_v24, %v1330_v22  ;;  %vm1380_vm9 = vweird.f32 %v2152_v24 }
 0x243   : > { %2153 = vrsqrt.f32 %v1331_v1  ;;  %vm1381_vm11 = vmor %vm1379_vm10, %vm1380_vm9  ;;  %vm1389_vm13 = vweird.f32 %v1331_v1 }
 0x244   : > { %v1372_v57 = vsel %vm1371_vm8, %v2150_v19, %v1368_v54  ;;  %v1375_v58 = vmul.f32 %v2152_v24, %v1374_v56 }
 0x245   : > { %v1505_v28 = vmul.f32 %v1372_v57, %v2849_v6 }
 0x246   : > { %v1376_v59 = vmul.f32 0.5, %v1375_v58 }
 0x247   : > { %1521 = vst [vmem:[%s2921_s12 + $0x10] sm:$0xff] %v1505_v28 }
 0x248   : > { %v1377_v12 = vsub.f32 1.5, %v1376_v59  ;;  %v1306_v32 = vpop.xlane.xlu2 %1305 }
 0x249   : > { %v2154_v38 = vpop.eup %2153  ;;  %v1332_v63 = vmax.f32 %v1306_v32, 1e-24 }
 0x24a   : > { %v1378_v0 = vmul.f32 %v2152_v24, %v1377_v12  ;;  %v1384_v51 = vmul.f32 %v2154_v38, %v1331_v1  ;;  %vm1390_vm12 = vweird.f32 %v2154_v38 }
 0x24b   : > { %2155 = vrsqrt.f32 %v1332_v63  ;;  %vm1391_vm14 = vmor %vm1389_vm13, %vm1390_vm12  ;;  %vm1399_vm0 = vweird.f32 %v1332_v63 }
 0x24c   : > { %v1382_v17 = vsel %vm1381_vm11, %v2152_v24, %v1378_v0  ;;  %v1385_v35 = vmul.f32 %v2154_v38, %v1384_v51 }
 0x24d   : > { %v1506_v2 = vmul.f32 %v1382_v17, %v2854_v29 }
 0x24e   : > { %v1386_v18 = vmul.f32 0.5, %v1385_v35 }
 0x24f   : > { %1522 = vst [vmem:[%s2921_s12 + $0x18] sm:$0xff] %v1506_v2 }
 0x250   : > { %v1387_v6 = vsub.f32 1.5, %v1386_v18  ;;  %v1308_v11 = vpop.xlane.xlu0 %1307 }
 0x251   : > { %v2156_v21 = vpop.eup %2155  ;;  %v1333_v8 = vmax.f32 %v1308_v11, 1e-24 }
 0x252   : > { %v1388_v25 = vmul.f32 %v2154_v38, %v1387_v6  ;;  %v1394_v3 = vmul.f32 %v2156_v21, %v1332_v63  ;;  %vm1400_vm15 = vweird.f32 %v2156_v21 }
 0x253   : > { %2157 = vrsqrt.f32 %v1333_v8  ;;  %vm1401_vm1 = vmor %vm1399_vm0, %vm1400_vm15  ;;  %vm1409_vm3 = vweird.f32 %v1333_v8 }
 0x254   : > { %v1392_v37 = vsel %vm1391_vm14, %v2154_v38, %v1388_v25  ;;  %v1395_v5 = vmul.f32 %v2156_v21, %v1394_v3 }
 0x255   : > { %v1507_v7 = vmul.f32 %v1392_v37, %v2859_v31 }
 0x256   : > { %v1396_v52 = vmul.f32 0.5, %v1395_v5 }
 0x257   : > { %1523 = vst [vmem:[%s2921_s12 + $0x20] sm:$0xff] %v1507_v7 }
 0x258   : > { %v1397_v29 = vsub.f32 1.5, %v1396_v52  ;;  %v1310_v55 = vpop.xlane.xlu1 %1309 }
 0x259   : > { %v2158_v34 = vpop.eup %2157  ;;  %v1334_v10 = vmax.f32 %v1310_v55, 1e-24 }
 0x25a   : > { %v1398_v36 = vmul.f32 %v2156_v21, %v1397_v29  ;;  %v1404_v42 = vmul.f32 %v2158_v34, %v1333_v8  ;;  %vm1410_vm2 = vweird.f32 %v2158_v34 }
 0x25b   : > { %2159 = vrsqrt.f32 %v1334_v10  ;;  %vm1411_vm4 = vmor %vm1409_vm3, %vm1410_vm2  ;;  %vm1419_vm6 = vweird.f32 %v1334_v10 }
 0x25c   : > { %v1402_v40 = vsel %vm1401_vm1, %v2156_v21, %v1398_v36  ;;  %v1405_v60 = vmul.f32 %v2158_v34, %v1404_v42 }
 0x25d   : > { %v1508_v27 = vmul.f32 %v1402_v40, %v2864_v46 }
 0x25e   : > { %v1406_v13 = vmul.f32 0.5, %v1405_v60 }
 0x25f   : > { %1524 = vst [vmem:[%s2921_s12 + $0x28] sm:$0xff] %v1508_v27 }
 0x260   : > { %v1407_v31 = vsub.f32 1.5, %v1406_v13  ;;  %v1312_v9 = vpop.xlane.xlu2 %1311 }
 0x261   : > { %v2160_v14 = vpop.eup %2159  ;;  %v1335_v15 = vmax.f32 %v1312_v9, 1e-24 }
 0x262   : > { %v1408_v43 = vmul.f32 %v2158_v34, %v1407_v31  ;;  %v1414_v19 = vmul.f32 %v2160_v14, %v1334_v10  ;;  %vm1420_vm5 = vweird.f32 %v2160_v14 }
 0x263   : > { %2161 = vrsqrt.f32 %v1335_v15  ;;  %vm1421_vm7 = vmor %vm1419_vm6, %vm1420_vm5  ;;  %vm1429_vm9 = vweird.f32 %v1335_v15 }
 0x264   : > { %v1412_v22 = vsel %vm1411_vm4, %v2158_v34, %v1408_v43  ;;  %v1415_v23 = vmul.f32 %v2160_v14, %v1414_v19 }
 0x265   : > { %v1509_v30 = vmul.f32 %v1412_v22, %v2869_v20 }
 0x266   : > { %v1416_v33 = vmul.f32 0.5, %v1415_v23 }
 0x267   : > { %1525 = vst [vmem:[%s2921_s12 + $0x30] sm:$0xff] %v1509_v30 }
 0x268   : > { %v1417_v46 = vsub.f32 1.5, %v1416_v33  ;;  %v1314_v26 = vpop.xlane.xlu0 %1313 }
 0x269   : > { %v2162_v45 = vpop.eup %2161  ;;  %v1336_v44 = vmax.f32 %v1314_v26, 1e-24 }
 0x26a   : > { %v1418_v41 = vmul.f32 %v2160_v14, %v1417_v46  ;;  %v1424_v49 = vmul.f32 %v2162_v45, %v1335_v15  ;;  %vm1430_vm8 = vweird.f32 %v2162_v45 }
 0x26b   : > { %2163 = vrsqrt.f32 %v1336_v44  ;;  %vm1431_vm10 = vmor %vm1429_vm9, %vm1430_vm8  ;;  %vm1439_vm12 = vweird.f32 %v1336_v44 }
 0x26c   : > { %v1422_v24 = vsel %vm1421_vm7, %v2160_v14, %v1418_v41  ;;  %v1425_v1 = vmul.f32 %v2162_v45, %v1424_v49 }
 0x26d   : > { %v1510_v54 = vmul.f32 %v1422_v24, %v2874_v47 }
 0x26e   : > { %v1426_v56 = vmul.f32 0.5, %v1425_v1 }
 0x26f   : > { %1526 = vst [vmem:[%s2921_s12 + $0x38] sm:$0xff] %v1510_v54 }
 0x270   : > { %v1427_v20 = vsub.f32 1.5, %v1426_v56  ;;  %v1316_v57 = vpop.xlane.xlu1 %1315 }
 0x271   : > { %v2164_v58 = vpop.eup %2163  ;;  %v1337_v28 = vmax.f32 %v1316_v57, 1e-24 }
 0x272   : > { %v1428_v59 = vmul.f32 %v2162_v45, %v1427_v20  ;;  %v1434_v12 = vmul.f32 %v2164_v58, %v1336_v44  ;;  %vm1440_vm11 = vweird.f32 %v2164_v58 }
 0x273   : > { %2165 = vrsqrt.f32 %v1337_v28  ;;  %vm1441_vm13 = vmor %vm1439_vm12, %vm1440_vm11  ;;  %vm1449_vm15 = vweird.f32 %v1337_v28 }
 0x274   : > { %v1432_v32 = vsel %vm1431_vm10, %v2162_v45, %v1428_v59  ;;  %v1435_v38 = vmul.f32 %v2164_v58, %v1434_v12 }
 0x275   : > { %v1511_v63 = vmul.f32 %v1432_v32, %v2879_v48 }
 0x276   : > { %v1436_v0 = vmul.f32 0.5, %v1435_v38 }
 0x277   : > { %1527 = vst [vmem:[%s2921_s12 + $0x40] sm:$0xff] %v1511_v63 }
 0x278   : > { %v1437_v47 = vsub.f32 1.5, %v1436_v0  ;;  %v1318_v51 = vpop.xlane.xlu2 %1317 }
 0x279   : > { %v2166_v17 = vpop.eup %2165  ;;  %v1338_v35 = vmax.f32 %v1318_v51, 1e-24 }
 0x27a   : > { %v1438_v2 = vmul.f32 %v2164_v58, %v1437_v47  ;;  %v1444_v18 = vmul.f32 %v2166_v17, %v1337_v28  ;;  %vm1450_vm14 = vweird.f32 %v2166_v17 }
 0x27b   : > { %2167 = vrsqrt.f32 %v1338_v35  ;;  %vm1451_vm0 = vmor %vm1449_vm15, %vm1450_vm14  ;;  %vm1459_vm2 = vweird.f32 %v1338_v35 }
 0x27c   : > { %v1442_v6 = vsel %vm1441_vm13, %v2164_v58, %v1438_v2  ;;  %v1445_v11 = vmul.f32 %v2166_v17, %v1444_v18 }
 0x27d   : > { %v1512_v21 = vmul.f32 %v1442_v6, %v2884_v16 }
 0x27e   : > { %v1446_v8 = vmul.f32 0.5, %v1445_v11 }
 0x27f   : > { %1528 = vst [vmem:[%s2921_s12 + $0x48] sm:$0xff] %v1512_v21 }
 0x280   : > { %v1447_v48 = vsub.f32 1.5, %v1446_v8  ;;  %v1320_v25 = vpop.xlane.xlu0 %1319 }
 0x281   : > { %v2168_v3 = vpop.eup %2167  ;;  %v1339_v37 = vmax.f32 %v1320_v25, 1e-24 }
 0x282   : > { %v1448_v5 = vmul.f32 %v2166_v17, %v1447_v48  ;;  %v1454_v7 = vmul.f32 %v2168_v3, %v1338_v35  ;;  %vm1460_vm1 = vweird.f32 %v2168_v3 }
 0x283   : > { %2169 = vrsqrt.f32 %v1339_v37  ;;  %vm1461_vm3 = vmor %vm1459_vm2, %vm1460_vm1  ;;  %vm1469_vm5 = vweird.f32 %v1339_v37 }
 0x284   : > { %v1452_v52 = vsel %vm1451_vm0, %v2166_v17, %v1448_v5  ;;  %v1455_v29 = vmul.f32 %v2168_v3, %v1454_v7 }
 0x285   : > { %v1513_v55 = vmul.f32 %v1452_v52, %v2889_v61 }
 0x286   : > { %v1456_v34 = vmul.f32 0.5, %v1455_v29 }
 0x287   : > { %1529 = vst [vmem:[%s2921_s12 + $0x50] sm:$0xff] %v1513_v55 }
 0x288   : > { %v1457_v16 = vsub.f32 1.5, %v1456_v34  ;;  %v1322_v10 = vpop.xlane.xlu1 %1321 }
 0x289   : > { %v2170_v36 = vpop.eup %2169  ;;  %v1340_v42 = vmax.f32 %v1322_v10, 1e-24 }
 0x28a   : > { %v1458_v40 = vmul.f32 %v2168_v3, %v1457_v16  ;;  %v1464_v60 = vmul.f32 %v2170_v36, %v1339_v37  ;;  %vm1470_vm4 = vweird.f32 %v2170_v36 }
 0x28b   : > { %2171 = vrsqrt.f32 %v1340_v42  ;;  %vm1471_vm6 = vmor %vm1469_vm5, %vm1470_vm4  ;;  %vm1479_vm8 = vweird.f32 %v1340_v42 }
 0x28c   : > { %v1462_v27 = vsel %vm1461_vm3, %v2168_v3, %v1458_v40  ;;  %v1465_v13 = vmul.f32 %v2170_v36, %v1464_v60 }
 0x28d   : > { %v1514_v31 = vmul.f32 %v1462_v27, %v2894_v62 }
 0x28e   : > { %v1466_v9 = vmul.f32 0.5, %v1465_v13 }
 0x28f   : > { %1530 = vst [vmem:[%s2921_s12 + $0x58] sm:$0xff] %v1514_v31 }
 0x290   : > { %v1467_v61 = vsub.f32 1.5, %v1466_v9  ;;  %v1324_v14 = vpop.xlane.xlu2 %1323 }
 0x291   : > { %v2172_v15 = vpop.eup %2171  ;;  %v1341_v43 = vmax.f32 %v1324_v14, 1e-24 }
 0x292   : > { %v1468_v19 = vmul.f32 %v2170_v36, %v1467_v61  ;;  %v1474_v22 = vmul.f32 %v2172_v15, %v1340_v42  ;;  %vm1480_vm7 = vweird.f32 %v2172_v15 }
 0x293   : > { %2173 = vrsqrt.f32 %v1341_v43  ;;  %vm1481_vm9 = vmor %vm1479_vm8, %vm1480_vm7  ;;  %vm1489_vm11 = vweird.f32 %v1341_v43 }
 0x294   : > { %v1472_v23 = vsel %vm1471_vm6, %v2170_v36, %v1468_v19  ;;  %v1475_v30 = vmul.f32 %v2172_v15, %v1474_v22 }
 0x295   : > { %v1515_v33 = vmul.f32 %v1472_v23, %v2899_v53 }
 0x296   : > { %v1476_v46 = vmul.f32 0.5, %v1475_v30 }
 0x297   : > { %1531 = vst [vmem:[%s2921_s12 + $0x60] sm:$0xff] %v1515_v33 }
 0x298   : > { %v1477_v62 = vsub.f32 1.5, %v1476_v46  ;;  %v1326_v26 = vpop.xlane.xlu0 %1325 }
 0x299   : > { %v2174_v45 = vpop.eup %2173  ;;  %v1342_v44 = vmax.f32 %v1326_v26, 1e-24 }
 0x29a   : > { %v1478_v41 = vmul.f32 %v2172_v15, %v1477_v62  ;;  %v1484_v49 = vmul.f32 %v2174_v45, %v1341_v43  ;;  %vm1490_vm10 = vweird.f32 %v2174_v45 }
 0x29b   : > { %2175 = vrsqrt.f32 %v1342_v44  ;;  %vm1491_vm12 = vmor %vm1489_vm11, %vm1490_vm10  ;;  %vm1499_vm14 = vweird.f32 %v1342_v44 }
 0x29c   : > { %v1482_v24 = vsel %vm1481_vm9, %v2172_v15, %v1478_v41  ;;  %v1485_v1 = vmul.f32 %v2174_v45, %v1484_v49 }
 0x29d   : > { %v1516_v54 = vmul.f32 %v1482_v24, %v2904_v39 }
 0x29e   : > { %v1486_v53 = vmul.f32 0.5, %v1485_v1 }
 0x29f   : > { %1532 = vst [vmem:[%s2921_s12 + $0x68] sm:$0xff] %v1516_v54 }
 0x2a0   : > { %v1487_v56 = vsub.f32 1.5, %v1486_v53 }
 0x2a1   : > { %v2176_v20 = vpop.eup %2175 }
 0x2a2   : > { %v1488_v57 = vmul.f32 %v2174_v45, %v1487_v56  ;;  %v1494_v58 = vmul.f32 %v2176_v20, %v1342_v44  ;;  %vm1500_vm13 = vweird.f32 %v2176_v20 }
 0x2a3   : > { %vm1501_vm15 = vmor %vm1499_vm14, %vm1500_vm13 }
 0x2a4   : > { %v1492_v28 = vsel %vm1491_vm12, %v2174_v45, %v1488_v57  ;;  %v1495_v59 = vmul.f32 %v2176_v20, %v1494_v58 }
 0x2a5   : > { %v1517_v12 = vmul.f32 %v1492_v28, %v2909_v50 }
 0x2a6   : > { %v1496_v32 = vmul.f32 0.5, %v1495_v59 }
 0x2a7   : > { %1533 = vst [vmem:[%s2921_s12 + $0x70] sm:$0xff] %v1517_v12 }
 0x2a8   : > { %v1497_v39 = vsub.f32 1.5, %v1496_v32 }
 0x2aa   : > { %v1498_v38 = vmul.f32 %v2176_v20, %v1497_v39 }
 0x2ac   : > { %v1502_v63 = vsel %vm1501_vm15, %v2176_v20, %v1498_v38 }
 0x2ad   : > { %v1518_v50 = vmul.f32 %v1502_v63, %v2914_v4 }
 0x2af   : > { %1534 = vst [vmem:[%s2921_s12 + $0x78] sm:$0xff] %v1518_v50 }
 0x2b0   : > { %2324 = shalt.err (!%p2321_p10)
}
 0x2b1   : > { %s2380_s26 = smov 128   ;;  %s2381_s29 = smov 8  }
 0x2b2   : > { %2011 = dma.vmem_to_hbm [thread:$0]  (%p2497_p3), %s1549_s15, 2048, %s1551_s7, %s1536_s22, %s2380_s26, %s2380_s26, %s2381_s29  }
 0x2b3 PF: > { %s1565_s12 = sand.u32 1, %s2359_s18   ;;  %p3008_p12 = scmp.ge.s32.totalorder %s2371_s21, 2 }
 0x2b4   : > { %s1566_s23 = scalar_lea.sflag [#allocation4], %s1565_s12 }
 0x2b5   : > { %p2028_p13 = pnand %p3008_p12, %p2447_p6 }
 0x2b7   : > { %p2029_p0 = pneg %p2028_p13 }
 0x2b9   : > { %2354 = dma.done.wait (%p2029_p0), %s1566_s23, 2048  }
 0x2ba   : > { %2356 = vsyncadd (%p2029_p0), %s1566_s23, 4294965248  ;;  %p20_p5 = scmp.ge.s32.totalorder %s2484_s30, 4   ;;  %s3009_s18 = smov %s2363_s19 }
 0x2bb   : > { %s3010_s19 = smov %s2367_s20  ;;  %s3011_s20 = smov %s2493_s9 }
 0x2bc   : > { %s3012_s21 = smov %s2484_s30  ;;  %22 = sbr.rel (!%p20_p5) target bundleno = 7 (0x7), region = 97 }
 0x2c1   :  { %1572 = vsyncpa [#allocation3], 1 }
 0x2c2   :  { %1574 = vsyncpa [#allocation3 + $0x1], 1 }
 0x2c3   :  { %1575 = vsyncpa [#allocation6], 1 }
 0x2c4   :  { %1576 = vsyncpa [#allocation9], 1 }
 0x2c5   :  { %1577 = vsyncpa [#allocation4], 1 }
 0x2c6   :  { %1579 = vsyncpa [#allocation4 + $0x1], 1 }

</bundles_post_ra>
